<compile_context>
chip_gen: v5e
topology: v5e:2x2
jax: 0.10.0
libtpu: 0.0.40
codegen_flags: <defaults>
</compile_context>

<pallas_src>
import math
import functools

import jax
import jax.numpy as jnp
from jax.experimental import pallas as pl
from jax.experimental.pallas import tpu as pltpu

_BN_EPS = 1e-5
_LANE = 128


# ----------------------------------------------------------------------------
# Small helpers
# ----------------------------------------------------------------------------
def _round_up(n, m):
    return ((n + m - 1) // m) * m


@functools.lru_cache(maxsize=None)
def _vmem_limit_bytes():
    cap = 64 * 1024 * 1024
    try:
        cap = int(pltpu.get_tpu_info().vmem_capacity_bytes)
    except Exception:
        pass
    # ~48 MiB on v7x (64 MiB/core), ~96 MiB on v5e/v6e (128 MiB).
    return int(min(100 * 1024 * 1024, max(32 * 1024 * 1024, cap * 3 // 4)))


def _pick_tile(n, cap, multiple=1):
    """Largest divisor of n that is <= cap and a multiple of `multiple` (else full n)."""
    cap = max(1, min(int(cap), n))
    for d in range(cap, 0, -1):
        if n % d == 0 and d % multiple == 0:
            return d
    return n  # full extent is always a legal block shape


def _resident_spec(shape):
    nd = len(shape)
    return pl.BlockSpec(shape, lambda i: (0,) * nd)   # weights / biases: constant block


def _compiler_params():
    return pltpu.CompilerParams(dimension_semantics=("parallel",),
                                vmem_limit_bytes=_vmem_limit_bytes())


# ----------------------------------------------------------------------------
# Kernels
# ----------------------------------------------------------------------------
def _attn_kernel(x_ref, scale_ref, shift_ref,
                 wq_ref, bq_ref, wk_ref, bk_ref, wv_ref, bv_ref,
                 wo_ref, bo_ref,
                 src_ref, stat_ref,
                 *, n_heads, compute_dtype):
    """Pending-BN -> multi-head self-attention -> residual; one (Bt,S,Dp) block per step."""
    bt, seq, dp = x_ref.shape
    y = (x_ref[...].astype(jnp.float32).reshape(bt * seq, dp)
         * scale_ref[...] + shift_ref[...])                        # (Bt*S, Dp) f32
    yc = y.astype(compute_dtype)

    # NOTE: 1/sqrt(head_dim) is already folded into wq / bq by prepare_params().
    q = jnp.dot(yc, wq_ref[...], preferred_element_type=jnp.float32) + bq_ref[...]
    k = jnp.dot(yc, wk_ref[...], preferred_element_type=jnp.float32) + bk_ref[...]
    v = jnp.dot(yc, wv_ref[...], preferred_element_type=jnp.float32) + bv_ref[...]
    d_qkv = q.shape[-1]
    hd = d_qkv // n_heads
    q3 = q.reshape(bt, seq, d_qkv)
    k3 = k.reshape(bt, seq, d_qkv)
    v3 = v.reshape(bt, seq, d_qkv)

    attn = jnp.zeros((bt * seq, dp), jnp.float32)
    for h in range(n_heads):                                       # small static unroll
        cols = slice(h * hd, (h + 1) * hd)
        s = jnp.einsum('bqd,bkd->bqk',
                       q3[:, :, cols].astype(compute_dtype),
                       k3[:, :, cols].astype(compute_dtype),
                       preferred_element_type=jnp.float32)         # (Bt, S, S)
        s = s - jnp.max(s, axis=-1, keepdims=True)
        p = jnp.exp(s)
        p = p * pl.reciprocal(jnp.sum(p, axis=-1, keepdims=True), approx=True)
        ctx_h = jnp.einsum('bqk,bkd->bqd',
                           p.astype(compute_dtype),
                           v3[:, :, cols].astype(compute_dtype),
                           preferred_element_type=jnp.float32)     # (Bt, S, hd)
        # Project this head's context straight through its Wo row-slice and accumulate:
        # heads are summed into the output projection (no per-head V masking, no
        # unaligned lane concatenation).
        attn = attn + jnp.dot(ctx_h.reshape(bt * seq, hd).astype(compute_dtype),
                              wo_ref[h * hd:(h + 1) * hd, :],
                              preferred_element_type=jnp.float32)

    src = y + attn + bo_ref[...]                                   # residual, f32
    src_ref[...] = src.reshape(bt, seq, dp).astype(src_ref.dtype)

    # Partial two-pass BatchNorm stats over this block's Bt*S tokens:
    # row 0 = sum, row 1 = centered sum-of-squares (combined host-side).
    ssum = jnp.sum(src, axis=0, keepdims=True)                     # (1, Dp)
    c = src - ssum * (1.0 / (bt * seq))
    m2 = jnp.sum(c * c, axis=0, keepdims=True)
    stat_ref[0] = jnp.concatenate([ssum, m2], axis=0)              # (2, Dp)


def _ffn_kernel(x_ref, scale_ref, shift_ref,
                w1_ref, b1_ref, w2_ref, b2_ref,
                src_ref, stat_ref, *, compute_dtype):
    """BatchNorm1 (folded) -> Linear/GELU/Linear -> residual; one (Tt,Dp) token block per step."""
    z = x_ref[...].astype(jnp.float32) * scale_ref[...] + shift_ref[...]   # (Tt, Dp) f32
    h1 = jnp.dot(z.astype(compute_dtype), w1_ref[...],
                 preferred_element_type=jnp.float32) + b1_ref[...]
    # TODO(synk): PyTorch F.gelu defaults to the exact erf form; tanh approximation used here.
    h1 = jax.nn.gelu(h1, approximate=True)
    h2 = jnp.dot(h1.astype(compute_dtype), w2_ref[...],
                 preferred_element_type=jnp.float32) + b2_ref[...]
    src = z + h2
    src_ref[...] = src.astype(src_ref.dtype)

    n_tok = src.shape[0]
    ssum = jnp.sum(src, axis=0, keepdims=True)
    c = src - ssum * (1.0 / n_tok)
    m2 = jnp.sum(c * c, axis=0, keepdims=True)
    stat_ref[0] = jnp.concatenate([ssum, m2], axis=0)


def _proj_kernel(x_ref, scale_ref, shift_ref, w_ref, b_ref, o_ref, *, compute_dtype):
    """Final BatchNorm2 (folded) -> Linear projection; one (Tt,Dp) token block per step."""
    y = x_ref[...].astype(jnp.float32) * scale_ref[...] + shift_ref[...]
    o_ref[...] = (jnp.dot(y.astype(compute_dtype), w_ref[...],
                          preferred_element_type=jnp.float32)
                  + b_ref[...]).astype(o_ref.dtype)


# ----------------------------------------------------------------------------
# pallas_call wrappers
# ----------------------------------------------------------------------------
def _mha_block(x, scale, shift, p, *, n_heads, compute_dtype, act_dtype):
    B, S, Dp = x.shape
    d_qkv = p['wq'].shape[1]
    act_sz = jnp.dtype(act_dtype).itemsize
    w_bytes = sum(int(a.size) * jnp.dtype(a.dtype).itemsize
                  for a in (p['wq'], p['wk'], p['wv'], p['wo']))
    # crude per-batch-row VMEM estimate: double-buffered act tiles + f32 temporaries + scores.
    per_row = S * Dp * (4 * act_sz + 6 * 4) + 4 * S * S * 4
    budget = _vmem_limit_bytes() - 2 * w_bytes - (8 << 20)
    bt = _pick_tile(B, max(1, budget // max(per_row, 1)))
    grid = (B // bt,)

    args = (x, scale, shift,
            p['wq'], p['bq'], p['wk'], p['bk'], p['wv'], p['bv'], p['wo'], p['bo'])
    act_spec = pl.BlockSpec((bt, S, Dp), lambda i: (i, 0, 0))
    stat_spec = pl.BlockSpec((1, 2, Dp), lambda i: (i, 0, 0))
    flops = 8 * B * S * Dp * d_qkv + 4 * B * S * S * d_qkv
    return pl.pallas_call(
        functools.partial(_attn_kernel, n_heads=n_heads, compute_dtype=compute_dtype),
        grid=grid,
        in_specs=[act_spec] + [_resident_spec(a.shape) for a in args[1:]],
        out_specs=(act_spec, stat_spec),
        out_shape=(jax.ShapeDtypeStruct((B, S, Dp), act_dtype),
                   jax.ShapeDtypeStruct((B // bt, 2, Dp), jnp.float32)),
        input_output_aliases={0: 0},
        compiler_params=_compiler_params(),
        cost_estimate=pl.CostEstimate(flops=flops,
                                      transcendentals=B * n_heads * S * S,
                                      bytes_accessed=2 * B * S * Dp * act_sz + w_bytes),
    )(*args)


def _ffn_block(x, scale, shift, p, *, compute_dtype, act_dtype):
    N, Dp = x.shape
    FFp = p['w1'].shape[1]
    act_sz = jnp.dtype(act_dtype).itemsize
    w_bytes = sum(int(a.size) * jnp.dtype(a.dtype).itemsize for a in (p['w1'], p['w2']))
    per_tok = Dp * (4 * act_sz + 3 * 4) + 2 * FFp * 4
    budget = _vmem_limit_bytes() - 2 * w_bytes - (8 << 20)
    tt = _pick_tile(N, max(1, budget // max(per_tok, 1)), multiple=8)
    grid = (N // tt,)

    args = (x, scale, shift, p['w1'], p['b1'], p['w2'], p['b2'])
    act_spec = pl.BlockSpec((tt, Dp), lambda i: (i, 0))
    stat_spec = pl.BlockSpec((1, 2, Dp), lambda i: (i, 0, 0))
    return pl.pallas_call(
        functools.partial(_ffn_kernel, compute_dtype=compute_dtype),
        grid=grid,
        in_specs=[act_spec] + [_resident_spec(a.shape) for a in args[1:]],
        out_specs=(act_spec, stat_spec),
        out_shape=(jax.ShapeDtypeStruct((N, Dp), act_dtype),
                   jax.ShapeDtypeStruct((N // tt, 2, Dp), jnp.float32)),
        input_output_aliases={0: 0},
        compiler_params=_compiler_params(),
        cost_estimate=pl.CostEstimate(flops=4 * N * Dp * FFp,
                                      transcendentals=N * FFp,
                                      bytes_accessed=2 * N * Dp * act_sz + w_bytes),
    )(*args)


def _proj_block(x, scale, shift, w, b, *, compute_dtype):
    N, Dp = x.shape
    OCp = w.shape[1]
    act_sz = jnp.dtype(x.dtype).itemsize
    w_bytes = int(w.size) * jnp.dtype(w.dtype).itemsize
    per_tok = Dp * (2 * act_sz + 2 * 4) + 4 * OCp * 4
    budget = _vmem_limit_bytes() - 2 * w_bytes - (8 << 20)
    tt = _pick_tile(N, max(1, budget // max(per_tok, 1)), multiple=8)
    grid = (N // tt,)

    args = (x, scale, shift, w, b)
    return pl.pallas_call(
        functools.partial(_proj_kernel, compute_dtype=compute_dtype),
        grid=grid,
        in_specs=[pl.BlockSpec((tt, Dp), lambda i: (i, 0))] +
                 [_resident_spec(a.shape) for a in args[1:]],
        out_specs=pl.BlockSpec((tt, OCp), lambda i: (i, 0)),
        out_shape=jax.ShapeDtypeStruct((N, OCp), jnp.float32),
        compiler_params=_compiler_params(),
        cost_estimate=pl.CostEstimate(flops=2 * N * Dp * OCp, transcendentals=0,
                                      bytes_accessed=N * (Dp * act_sz + OCp * 4) + w_bytes),
    )(*args)


# ----------------------------------------------------------------------------
# BatchNorm fold (second pass, tiny) and forward pass
# ----------------------------------------------------------------------------
def _bn_fold(stats, gamma, beta, n_tokens):
    """Combine per-block (sum, centered SSQ) stats into a folded BatchNorm1d (scale, shift)."""
    nb = stats.shape[0]
    tpb = n_tokens // nb                                           # tokens per block (uniform)
    sums = stats[:, 0, :]                                          # (nb, Dp)
    m2s = stats[:, 1, :]
    mean = jnp.sum(sums, axis=0, keepdims=True) / n_tokens         # (1, Dp)
    block_mean = sums / tpb
    between = tpb * jnp.sum((block_mean - mean) ** 2, axis=0, keepdims=True)
    var = (jnp.sum(m2s, axis=0, keepdims=True) + between) / n_tokens
    inv = jax.lax.rsqrt(var + _BN_EPS)
    scale = gamma * inv
    shift = beta - mean * scale
    return scale, shift


@functools.partial(jax.jit,
                   static_argnames=("n_heads", "out_channels", "compute_dtype", "act_dtype"))
def trans_encoder_forward(x, params, *, n_heads, out_channels,
                          compute_dtype=jnp.bfloat16, act_dtype=jnp.bfloat16):
    """x: (B, S, D) -> (B, S, out_channels).  `params` must come from prepare_params()."""
    B, S, D = x.shape
    Dp = params['pe'].shape[1]
    n_tok = B * S
    xp = jnp.pad(x.astype(jnp.float32), ((0, 0), (0, 0), (0, Dp - D)))
    h = (xp + params['pe'][None, :S, :]).astype(act_dtype)         # fixed positional encoding
    # Pending normalization folded into the next kernel (identity before layer 0).
    scale = jnp.ones((1, Dp), jnp.float32)
    shift = jnp.zeros((1, Dp), jnp.float32)
    for lp in params['layers']:
        src1, st1 = _mha_block(h, scale, shift, lp, n_heads=n_heads,
                               compute_dtype=compute_dtype, act_dtype=act_dtype)
        sc1, sh1 = _bn_fold(st1, lp['g1'], lp['be1'], n_tok)
        src2, st2 = _ffn_block(src1.reshape(n_tok, Dp), sc1, sh1, lp,
                               compute_dtype=compute_dtype, act_dtype=act_dtype)
        scale, shift = _bn_fold(st2, lp['g2'], lp['be2'], n_tok)
        h = src2.reshape(B, S, Dp)
    out = _proj_block(h.reshape(n_tok, Dp), scale, shift,
                      params['proj_w'], params['proj_b'], compute_dtype=compute_dtype)
    return out.reshape(B, S, -1)[..., :out_channels]               # strip lane padding


# ----------------------------------------------------------------------------
# Parameter setup (plain JAX glue, done once outside the jitted forward)
# ----------------------------------------------------------------------------
def fixed_positional_encoding(max_len, d_model, scale_factor=1.0):
    position = jnp.arange(max_len, dtype=jnp.float32)[:, None]
    div_term = jnp.exp(jnp.arange(0, d_model, 2, dtype=jnp.float32)
                       * -(math.log(10000.0) / d_model))
    pe = jnp.zeros((max_len, d_model), jnp.float32)
    pe = pe.at[:, 0::2].set(jnp.sin(position * div_term))
    pe = pe.at[:, 1::2].set(jnp.cos(position * div_term))
    return scale_factor * pe


def init_params(key, d_model, n_layers, d_ff, out_channels, max_len):
    def lin(k, fan_in, fan_out, scale=0.05):
        return scale * jax.random.normal(k, (fan_in, fan_out), jnp.float32)

    layers = []
    keys = jax.random.split(key, n_layers + 1)
    for l in range(n_layers):
        ks = jax.random.split(keys[l], 12)
        layers.append(dict(
            wq=lin(ks[0], d_model, d_model), bq=lin(ks[1], 1, d_model),
            wk=lin(ks[2], d_model, d_model), bk=lin(ks[3], 1, d_model),
            wv=lin(ks[4], d_model, d_model), bv=lin(ks[5], 1, d_model),
            wo=lin(ks[6], d_model, d_model), bo=lin(ks[7], 1, d_model),
            w1=lin(ks[8], d_model, d_ff),    b1=lin(ks[9], 1, d_ff),
            w2=lin(ks[10], d_ff, d_model),   b2=lin(ks[11], 1, d_model),
            g1=jnp.ones((1, d_model), jnp.float32),
            be1=jnp.zeros((1, d_model), jnp.float32),
            g2=jnp.ones((1, d_model), jnp.float32),
            be2=jnp.zeros((1, d_model), jnp.float32),
        ))
    kp1, kp2 = jax.random.split(keys[-1])
    return dict(
        pe=fixed_positional_encoding(max_len, d_model),
        layers=layers,
        proj_w=lin(kp1, d_model, out_channels),
        proj_b=lin(kp2, 1, out_channels),
    )


def _pad2(a, rows, cols):
    r, c = a.shape
    return jnp.pad(a, ((0, rows - r), (0, cols - c)))


def prepare_params(params, *, n_heads, compute_dtype=jnp.bfloat16):
    """Pad channel dims to multiples of 128 (lane-dense stores; padded channels stay 0),
    fold 1/sqrt(head_dim) into Wq/bq and pre-cast matmul weights to the compute dtype."""
    pe = params['pe']
    max_len, D = pe.shape
    Dp = _round_up(D, _LANE)
    hd = D // n_heads
    inv = 1.0 / math.sqrt(hd)
    out = dict(pe=_pad2(pe, max_len, Dp), layers=[])
    for p in params['layers']:
        d_ff = p['w1'].shape[1]
        FFp = _round_up(d_ff, _LANE)
        out['layers'].append(dict(
            wq=_pad2(p['wq'] * inv, Dp, D).astype(compute_dtype), bq=p['bq'] * inv,
            wk=_pad2(p['wk'], Dp, D).astype(compute_dtype),       bk=p['bk'],
            wv=_pad2(p['wv'], Dp, D).astype(compute_dtype),       bv=p['bv'],
            wo=_pad2(p['wo'], D, Dp).astype(compute_dtype),       bo=_pad2(p['bo'], 1, Dp),
            w1=_pad2(p['w1'], Dp, FFp).astype(compute_dtype),     b1=_pad2(p['b1'], 1, FFp),
            w2=_pad2(p['w2'], FFp, Dp).astype(compute_dtype),     b2=_pad2(p['b2'], 1, Dp),
            g1=_pad2(p['g1'], 1, Dp), be1=_pad2(p['be1'], 1, Dp),
            g2=_pad2(p['g2'], 1, Dp), be2=_pad2(p['be2'], 1, Dp),
        ))
    oc = params['proj_w'].shape[1]
    OCp = _round_up(oc, _LANE)
    out['proj_w'] = _pad2(params['proj_w'], Dp, OCp).astype(compute_dtype)
    out['proj_b'] = _pad2(params['proj_b'], 1, OCp)
    return out


# ----------------------------------------------------------------------------
if __name__ == "__main__":
    B, S, D = 2, 16, 32          # batch, in_length, in_channels
    n_heads, n_layers = 4, 2
    d_ff = 64                    # transblockdim (small for the demo)
    out_channels = 8

    key = jax.random.PRNGKey(0)
    kx, kp = jax.random.split(key)
    x = jax.random.normal(kx, (B, S, D), jnp.float32)
    raw_params = init_params(kp, D, n_layers, d_ff, out_channels, max_len=S)
    params = prepare_params(raw_params, n_heads=n_heads)

    out = trans_encoder_forward(x, params, n_heads=n_heads, out_channels=out_channels)
    out = jax.block_until_ready(out)
    assert out.shape == (B, S, out_channels)
    assert bool(jnp.all(jnp.isfinite(out)))
    print("KERNEL_OK")
</pallas_src>

<mosaic_0001>
module attributes {stable_mosaic.version = 11 : i64} {
  func.func @_attn_kernel(%arg0: i32, %arg1: memref<2x16x128xbf16, #tpu.memory_space<vmem>>, %arg2: memref<1x128xf32, #tpu.memory_space<vmem>>, %arg3: memref<1x128xf32, #tpu.memory_space<vmem>>, %arg4: memref<128x32xbf16, #tpu.memory_space<vmem>>, %arg5: memref<1x32xf32, #tpu.memory_space<vmem>>, %arg6: memref<128x32xbf16, #tpu.memory_space<vmem>>, %arg7: memref<1x32xf32, #tpu.memory_space<vmem>>, %arg8: memref<128x32xbf16, #tpu.memory_space<vmem>>, %arg9: memref<1x32xf32, #tpu.memory_space<vmem>>, %arg10: memref<32x128xbf16, #tpu.memory_space<vmem>>, %arg11: memref<1x128xf32, #tpu.memory_space<vmem>>, %arg12: memref<2x16x128xbf16, #tpu.memory_space<vmem>>, %arg13: memref<1x2x128xf32, #tpu.memory_space<vmem>>) attributes {dimension_semantics = [#tpu.dimension_semantics<parallel>], iteration_bounds = array<i64: 1>, scalar_prefetch = 0 : i64, scratch_operands = 0 : i64, tpu.core_type = #tpu.core_type<tc>, window_params = [{transform_indices = @transform_0, window_bounds = array<i64: 2, 16, 128>}, {pipeline_mode = #tpu.pipeline_mode<synchronous>, transform_indices = @transform_1, window_bounds = array<i64: 1, 128>}, {pipeline_mode = #tpu.pipeline_mode<synchronous>, transform_indices = @transform_2, window_bounds = array<i64: 1, 128>}, {pipeline_mode = #tpu.pipeline_mode<synchronous>, transform_indices = @transform_3, window_bounds = array<i64: 128, 32>}, {pipeline_mode = #tpu.pipeline_mode<synchronous>, transform_indices = @transform_4, window_bounds = array<i64: 1, 32>}, {pipeline_mode = #tpu.pipeline_mode<synchronous>, transform_indices = @transform_5, window_bounds = array<i64: 128, 32>}, {pipeline_mode = #tpu.pipeline_mode<synchronous>, transform_indices = @transform_6, window_bounds = array<i64: 1, 32>}, {pipeline_mode = #tpu.pipeline_mode<synchronous>, transform_indices = @transform_7, window_bounds = array<i64: 128, 32>}, {pipeline_mode = #tpu.pipeline_mode<synchronous>, transform_indices = @transform_8, window_bounds = array<i64: 1, 32>}, {pipeline_mode = #tpu.pipeline_mode<synchronous>, transform_indices = @transform_9, window_bounds = array<i64: 32, 128>}, {pipeline_mode = #tpu.pipeline_mode<synchronous>, transform_indices = @transform_10, window_bounds = array<i64: 1, 128>}, {transform_indices = @transform_11, window_bounds = array<i64: 2, 16, 128>}, {transform_indices = @transform_12, window_bounds = array<i64: 1, 2, 128>}]} {
    %c0 = arith.constant 0 : index
    %c0_0 = arith.constant 0 : index
    %c0_1 = arith.constant 0 : index
    %0 = vector.load %arg1[%c0, %c0_0, %c0_1] : memref<2x16x128xbf16, #tpu.memory_space<vmem>>, vector<2x16x128xbf16>
    %1 = arith.extf %0 : vector<2x16x128xbf16> to vector<2x16x128xf32>
    %2 = vector.shape_cast %1 : vector<2x16x128xf32> to vector<32x128xf32>
    %c0_2 = arith.constant 0 : index
    %c0_3 = arith.constant 0 : index
    %3 = vector.load %arg2[%c0_2, %c0_3] : memref<1x128xf32, #tpu.memory_space<vmem>>, vector<1x128xf32>
    %4 = vector.broadcast %3 : vector<1x128xf32> to vector<32x128xf32>
    %5 = arith.mulf %2, %4 : vector<32x128xf32>
    %c0_4 = arith.constant 0 : index
    %c0_5 = arith.constant 0 : index
    %6 = vector.load %arg3[%c0_4, %c0_5] : memref<1x128xf32, #tpu.memory_space<vmem>>, vector<1x128xf32>
    %7 = vector.broadcast %6 : vector<1x128xf32> to vector<32x128xf32>
    %8 = arith.addf %5, %7 : vector<32x128xf32>
    %9 = arith.truncf %8 : vector<32x128xf32> to vector<32x128xbf16>
    %c0_6 = arith.constant 0 : index
    %c0_7 = arith.constant 0 : index
    %10 = vector.load %arg4[%c0_6, %c0_7] : memref<128x32xbf16, #tpu.memory_space<vmem>>, vector<128x32xbf16>
    %cst = arith.constant dense<0.000000e+00> : vector<32x32xf32>
    %11 = tpu.matmul %9, %10, %cst {dimension_numbers = #tpu.dot_dimension_numbers<[1], [0], [0], [1], [0, 0, 1, 1], [], []>} : vector<32x128xbf16>, vector<128x32xbf16>, vector<32x32xf32> -> vector<32x32xf32>
    %c0_8 = arith.constant 0 : index
    %c0_9 = arith.constant 0 : index
    %12 = vector.load %arg5[%c0_8, %c0_9] : memref<1x32xf32, #tpu.memory_space<vmem>>, vector<1x32xf32>
    %13 = vector.broadcast %12 : vector<1x32xf32> to vector<32x32xf32>
    %14 = arith.addf %11, %13 : vector<32x32xf32>
    %c0_10 = arith.constant 0 : index
    %c0_11 = arith.constant 0 : index
    %15 = vector.load %arg6[%c0_10, %c0_11] : memref<128x32xbf16, #tpu.memory_space<vmem>>, vector<128x32xbf16>
    %cst_12 = arith.constant dense<0.000000e+00> : vector<32x32xf32>
    %16 = tpu.matmul %9, %15, %cst_12 {dimension_numbers = #tpu.dot_dimension_numbers<[1], [0], [0], [1], [0, 0, 1, 1], [], []>} : vector<32x128xbf16>, vector<128x32xbf16>, vector<32x32xf32> -> vector<32x32xf32>
    %c0_13 = arith.constant 0 : index
    %c0_14 = arith.constant 0 : index
    %17 = vector.load %arg7[%c0_13, %c0_14] : memref<1x32xf32, #tpu.memory_space<vmem>>, vector<1x32xf32>
    %18 = vector.broadcast %17 : vector<1x32xf32> to vector<32x32xf32>
    %19 = arith.addf %16, %18 : vector<32x32xf32>
    %c0_15 = arith.constant 0 : index
    %c0_16 = arith.constant 0 : index
    %20 = vector.load %arg8[%c0_15, %c0_16] : memref<128x32xbf16, #tpu.memory_space<vmem>>, vector<128x32xbf16>
    %cst_17 = arith.constant dense<0.000000e+00> : vector<32x32xf32>
    %21 = tpu.matmul %9, %20, %cst_17 {dimension_numbers = #tpu.dot_dimension_numbers<[1], [0], [0], [1], [0, 0, 1, 1], [], []>} : vector<32x128xbf16>, vector<128x32xbf16>, vector<32x32xf32> -> vector<32x32xf32>
    %c0_18 = arith.constant 0 : index
    %c0_19 = arith.constant 0 : index
    %22 = vector.load %arg9[%c0_18, %c0_19] : memref<1x32xf32, #tpu.memory_space<vmem>>, vector<1x32xf32>
    %23 = vector.broadcast %22 : vector<1x32xf32> to vector<32x32xf32>
    %24 = arith.addf %21, %23 : vector<32x32xf32>
    %25 = vector.shape_cast %14 : vector<32x32xf32> to vector<2x16x32xf32>
    %26 = vector.shape_cast %19 : vector<32x32xf32> to vector<2x16x32xf32>
    %27 = vector.shape_cast %24 : vector<32x32xf32> to vector<2x16x32xf32>
    %cst_20 = arith.constant 0.000000e+00 : f32
    %28 = vector.broadcast %cst_20 : f32 to vector<32x128xf32>
    %29 = vector.extract_strided_slice %25 {offsets = [0, 0, 0], sizes = [2, 16, 8], strides = [1, 1, 1]} : vector<2x16x32xf32> to vector<2x16x8xf32>
    %30 = arith.truncf %29 : vector<2x16x8xf32> to vector<2x16x8xbf16>
    %31 = vector.extract_strided_slice %26 {offsets = [0, 0, 0], sizes = [2, 16, 8], strides = [1, 1, 1]} : vector<2x16x32xf32> to vector<2x16x8xf32>
    %32 = arith.truncf %31 : vector<2x16x8xf32> to vector<2x16x8xbf16>
    "tpu.trace_start"() <{level = 10 : i32, message = "bqd,bkd->bqk"}> : () -> ()
    %cst_21 = arith.constant dense<0.000000e+00> : vector<2x16x16xf32>
    %33 = tpu.matmul %30, %32, %cst_21 {dimension_numbers = #tpu.dot_dimension_numbers<[2], [2], [1], [1], [0, 0, 0, 1, 1, 1], [0], [0]>} : vector<2x16x8xbf16>, vector<2x16x8xbf16>, vector<2x16x16xf32> -> vector<2x16x16xf32>
    "tpu.trace_stop"() : () -> ()
    %cst_22 = arith.constant dense<0xFF800000> : vector<2x16xf32>
    %34 = vector.multi_reduction <maximumf>, %33, %cst_22 [2] : vector<2x16x16xf32> to vector<2x16xf32>
    %35 = vector.shape_cast %34 : vector<2x16xf32> to vector<2x16x1xf32>
    %36 = vector.broadcast %35 : vector<2x16x1xf32> to vector<2x16x16xf32>
    %37 = arith.subf %33, %36 : vector<2x16x16xf32>
    %38 = math.exp %37 : vector<2x16x16xf32>
    %cst_23 = arith.constant dense<0.000000e+00> : vector<2x16xf32>
    %39 = vector.multi_reduction <add>, %38, %cst_23 [2] : vector<2x16x16xf32> to vector<2x16xf32>
    %40 = vector.shape_cast %39 : vector<2x16xf32> to vector<2x16x1xf32>
    %41 = tpu.reciprocal %40 {approx = true} : vector<2x16x1xf32> -> vector<2x16x1xf32>
    %42 = vector.broadcast %41 : vector<2x16x1xf32> to vector<2x16x16xf32>
    %43 = arith.mulf %38, %42 : vector<2x16x16xf32>
    %44 = arith.truncf %43 : vector<2x16x16xf32> to vector<2x16x16xbf16>
    %45 = vector.extract_strided_slice %27 {offsets = [0, 0, 0], sizes = [2, 16, 8], strides = [1, 1, 1]} : vector<2x16x32xf32> to vector<2x16x8xf32>
    %46 = arith.truncf %45 : vector<2x16x8xf32> to vector<2x16x8xbf16>
    "tpu.trace_start"() <{level = 10 : i32, message = "bqk,bkd->bqd"}> : () -> ()
    %cst_24 = arith.constant dense<0.000000e+00> : vector<2x16x8xf32>
    %47 = tpu.matmul %44, %46, %cst_24 {dimension_numbers = #tpu.dot_dimension_numbers<[2], [1], [1], [2], [0, 0, 0, 1, 1, 2], [0], [0]>} : vector<2x16x16xbf16>, vector<2x16x8xbf16>, vector<2x16x8xf32> -> vector<2x16x8xf32>
    "tpu.trace_stop"() : () -> ()
    %48 = vector.shape_cast %47 : vector<2x16x8xf32> to vector<32x8xf32>
    %49 = arith.truncf %48 : vector<32x8xf32> to vector<32x8xbf16>
    %c0_25 = arith.constant 0 : index
    %c0_26 = arith.constant 0 : index
    %50 = vector.load %arg10[%c0_25, %c0_26] : memref<32x128xbf16, #tpu.memory_space<vmem>>, vector<8x128xbf16>
    %cst_27 = arith.constant dense<0.000000e+00> : vector<32x128xf32>
    %51 = tpu.matmul %49, %50, %cst_27 {dimension_numbers = #tpu.dot_dimension_numbers<[1], [0], [0], [1], [0, 0, 1, 1], [], []>} : vector<32x8xbf16>, vector<8x128xbf16>, vector<32x128xf32> -> vector<32x128xf32>
    %52 = arith.addf %28, %51 : vector<32x128xf32>
    %53 = vector.extract_strided_slice %25 {offsets = [0, 0, 8], sizes = [2, 16, 8], strides = [1, 1, 1]} : vector<2x16x32xf32> to vector<2x16x8xf32>
    %54 = arith.truncf %53 : vector<2x16x8xf32> to vector<2x16x8xbf16>
    %55 = vector.extract_strided_slice %26 {offsets = [0, 0, 8], sizes = [2, 16, 8], strides = [1, 1, 1]} : vector<2x16x32xf32> to vector<2x16x8xf32>
    %56 = arith.truncf %55 : vector<2x16x8xf32> to vector<2x16x8xbf16>
    "tpu.trace_start"() <{level = 10 : i32, message = "bqd,bkd->bqk"}> : () -> ()
    %cst_28 = arith.constant dense<0.000000e+00> : vector<2x16x16xf32>
    %57 = tpu.matmul %54, %56, %cst_28 {dimension_numbers = #tpu.dot_dimension_numbers<[2], [2], [1], [1], [0, 0, 0, 1, 1, 1], [0], [0]>} : vector<2x16x8xbf16>, vector<2x16x8xbf16>, vector<2x16x16xf32> -> vector<2x16x16xf32>
    "tpu.trace_stop"() : () -> ()
    %cst_29 = arith.constant dense<0xFF800000> : vector<2x16xf32>
    %58 = vector.multi_reduction <maximumf>, %57, %cst_29 [2] : vector<2x16x16xf32> to vector<2x16xf32>
    %59 = vector.shape_cast %58 : vector<2x16xf32> to vector<2x16x1xf32>
    %60 = vector.broadcast %59 : vector<2x16x1xf32> to vector<2x16x16xf32>
    %61 = arith.subf %57, %60 : vector<2x16x16xf32>
    %62 = math.exp %61 : vector<2x16x16xf32>
    %cst_30 = arith.constant dense<0.000000e+00> : vector<2x16xf32>
    %63 = vector.multi_reduction <add>, %62, %cst_30 [2] : vector<2x16x16xf32> to vector<2x16xf32>
    %64 = vector.shape_cast %63 : vector<2x16xf32> to vector<2x16x1xf32>
    %65 = tpu.reciprocal %64 {approx = true} : vector<2x16x1xf32> -> vector<2x16x1xf32>
    %66 = vector.broadcast %65 : vector<2x16x1xf32> to vector<2x16x16xf32>
    %67 = arith.mulf %62, %66 : vector<2x16x16xf32>
    %68 = arith.truncf %67 : vector<2x16x16xf32> to vector<2x16x16xbf16>
    %69 = vector.extract_strided_slice %27 {offsets = [0, 0, 8], sizes = [2, 16, 8], strides = [1, 1, 1]} : vector<2x16x32xf32> to vector<2x16x8xf32>
    %70 = arith.truncf %69 : vector<2x16x8xf32> to vector<2x16x8xbf16>
    "tpu.trace_start"() <{level = 10 : i32, message = "bqk,bkd->bqd"}> : () -> ()
    %cst_31 = arith.constant dense<0.000000e+00> : vector<2x16x8xf32>
    %71 = tpu.matmul %68, %70, %cst_31 {dimension_numbers = #tpu.dot_dimension_numbers<[2], [1], [1], [2], [0, 0, 0, 1, 1, 2], [0], [0]>} : vector<2x16x16xbf16>, vector<2x16x8xbf16>, vector<2x16x8xf32> -> vector<2x16x8xf32>
    "tpu.trace_stop"() : () -> ()
    %72 = vector.shape_cast %71 : vector<2x16x8xf32> to vector<32x8xf32>
    %73 = arith.truncf %72 : vector<32x8xf32> to vector<32x8xbf16>
    %c8 = arith.constant 8 : index
    %c0_32 = arith.constant 0 : index
    %74 = vector.load %arg10[%c8, %c0_32] : memref<32x128xbf16, #tpu.memory_space<vmem>>, vector<8x128xbf16>
    %cst_33 = arith.constant dense<0.000000e+00> : vector<32x128xf32>
    %75 = tpu.matmul %73, %74, %cst_33 {dimension_numbers = #tpu.dot_dimension_numbers<[1], [0], [0], [1], [0, 0, 1, 1], [], []>} : vector<32x8xbf16>, vector<8x128xbf16>, vector<32x128xf32> -> vector<32x128xf32>
    %76 = arith.addf %52, %75 : vector<32x128xf32>
    %77 = vector.extract_strided_slice %25 {offsets = [0, 0, 16], sizes = [2, 16, 8], strides = [1, 1, 1]} : vector<2x16x32xf32> to vector<2x16x8xf32>
    %78 = arith.truncf %77 : vector<2x16x8xf32> to vector<2x16x8xbf16>
    %79 = vector.extract_strided_slice %26 {offsets = [0, 0, 16], sizes = [2, 16, 8], strides = [1, 1, 1]} : vector<2x16x32xf32> to vector<2x16x8xf32>
    %80 = arith.truncf %79 : vector<2x16x8xf32> to vector<2x16x8xbf16>
    "tpu.trace_start"() <{level = 10 : i32, message = "bqd,bkd->bqk"}> : () -> ()
    %cst_34 = arith.constant dense<0.000000e+00> : vector<2x16x16xf32>
    %81 = tpu.matmul %78, %80, %cst_34 {dimension_numbers = #tpu.dot_dimension_numbers<[2], [2], [1], [1], [0, 0, 0, 1, 1, 1], [0], [0]>} : vector<2x16x8xbf16>, vector<2x16x8xbf16>, vector<2x16x16xf32> -> vector<2x16x16xf32>
    "tpu.trace_stop"() : () -> ()
    %cst_35 = arith.constant dense<0xFF800000> : vector<2x16xf32>
    %82 = vector.multi_reduction <maximumf>, %81, %cst_35 [2] : vector<2x16x16xf32> to vector<2x16xf32>
    %83 = vector.shape_cast %82 : vector<2x16xf32> to vector<2x16x1xf32>
    %84 = vector.broadcast %83 : vector<2x16x1xf32> to vector<2x16x16xf32>
    %85 = arith.subf %81, %84 : vector<2x16x16xf32>
    %86 = math.exp %85 : vector<2x16x16xf32>
    %cst_36 = arith.constant dense<0.000000e+00> : vector<2x16xf32>
    %87 = vector.multi_reduction <add>, %86, %cst_36 [2] : vector<2x16x16xf32> to vector<2x16xf32>
    %88 = vector.shape_cast %87 : vector<2x16xf32> to vector<2x16x1xf32>
    %89 = tpu.reciprocal %88 {approx = true} : vector<2x16x1xf32> -> vector<2x16x1xf32>
    %90 = vector.broadcast %89 : vector<2x16x1xf32> to vector<2x16x16xf32>
    %91 = arith.mulf %86, %90 : vector<2x16x16xf32>
    %92 = arith.truncf %91 : vector<2x16x16xf32> to vector<2x16x16xbf16>
    %93 = vector.extract_strided_slice %27 {offsets = [0, 0, 16], sizes = [2, 16, 8], strides = [1, 1, 1]} : vector<2x16x32xf32> to vector<2x16x8xf32>
    %94 = arith.truncf %93 : vector<2x16x8xf32> to vector<2x16x8xbf16>
    "tpu.trace_start"() <{level = 10 : i32, message = "bqk,bkd->bqd"}> : () -> ()
    %cst_37 = arith.constant dense<0.000000e+00> : vector<2x16x8xf32>
    %95 = tpu.matmul %92, %94, %cst_37 {dimension_numbers = #tpu.dot_dimension_numbers<[2], [1], [1], [2], [0, 0, 0, 1, 1, 2], [0], [0]>} : vector<2x16x16xbf16>, vector<2x16x8xbf16>, vector<2x16x8xf32> -> vector<2x16x8xf32>
    "tpu.trace_stop"() : () -> ()
    %96 = vector.shape_cast %95 : vector<2x16x8xf32> to vector<32x8xf32>
    %97 = arith.truncf %96 : vector<32x8xf32> to vector<32x8xbf16>
    %c16 = arith.constant 16 : index
    %c0_38 = arith.constant 0 : index
    %98 = vector.load %arg10[%c16, %c0_38] : memref<32x128xbf16, #tpu.memory_space<vmem>>, vector<8x128xbf16>
    %cst_39 = arith.constant dense<0.000000e+00> : vector<32x128xf32>
    %99 = tpu.matmul %97, %98, %cst_39 {dimension_numbers = #tpu.dot_dimension_numbers<[1], [0], [0], [1], [0, 0, 1, 1], [], []>} : vector<32x8xbf16>, vector<8x128xbf16>, vector<32x128xf32> -> vector<32x128xf32>
    %100 = arith.addf %76, %99 : vector<32x128xf32>
    %101 = vector.extract_strided_slice %25 {offsets = [0, 0, 24], sizes = [2, 16, 8], strides = [1, 1, 1]} : vector<2x16x32xf32> to vector<2x16x8xf32>
    %102 = arith.truncf %101 : vector<2x16x8xf32> to vector<2x16x8xbf16>
    %103 = vector.extract_strided_slice %26 {offsets = [0, 0, 24], sizes = [2, 16, 8], strides = [1, 1, 1]} : vector<2x16x32xf32> to vector<2x16x8xf32>
    %104 = arith.truncf %103 : vector<2x16x8xf32> to vector<2x16x8xbf16>
    "tpu.trace_start"() <{level = 10 : i32, message = "bqd,bkd->bqk"}> : () -> ()
    %cst_40 = arith.constant dense<0.000000e+00> : vector<2x16x16xf32>
    %105 = tpu.matmul %102, %104, %cst_40 {dimension_numbers = #tpu.dot_dimension_numbers<[2], [2], [1], [1], [0, 0, 0, 1, 1, 1], [0], [0]>} : vector<2x16x8xbf16>, vector<2x16x8xbf16>, vector<2x16x16xf32> -> vector<2x16x16xf32>
    "tpu.trace_stop"() : () -> ()
    %cst_41 = arith.constant dense<0xFF800000> : vector<2x16xf32>
    %106 = vector.multi_reduction <maximumf>, %105, %cst_41 [2] : vector<2x16x16xf32> to vector<2x16xf32>
    %107 = vector.shape_cast %106 : vector<2x16xf32> to vector<2x16x1xf32>
    %108 = vector.broadcast %107 : vector<2x16x1xf32> to vector<2x16x16xf32>
    %109 = arith.subf %105, %108 : vector<2x16x16xf32>
    %110 = math.exp %109 : vector<2x16x16xf32>
    %cst_42 = arith.constant dense<0.000000e+00> : vector<2x16xf32>
    %111 = vector.multi_reduction <add>, %110, %cst_42 [2] : vector<2x16x16xf32> to vector<2x16xf32>
    %112 = vector.shape_cast %111 : vector<2x16xf32> to vector<2x16x1xf32>
    %113 = tpu.reciprocal %112 {approx = true} : vector<2x16x1xf32> -> vector<2x16x1xf32>
    %114 = vector.broadcast %113 : vector<2x16x1xf32> to vector<2x16x16xf32>
    %115 = arith.mulf %110, %114 : vector<2x16x16xf32>
    %116 = arith.truncf %115 : vector<2x16x16xf32> to vector<2x16x16xbf16>
    %117 = vector.extract_strided_slice %27 {offsets = [0, 0, 24], sizes = [2, 16, 8], strides = [1, 1, 1]} : vector<2x16x32xf32> to vector<2x16x8xf32>
    %118 = arith.truncf %117 : vector<2x16x8xf32> to vector<2x16x8xbf16>
    "tpu.trace_start"() <{level = 10 : i32, message = "bqk,bkd->bqd"}> : () -> ()
    %cst_43 = arith.constant dense<0.000000e+00> : vector<2x16x8xf32>
    %119 = tpu.matmul %116, %118, %cst_43 {dimension_numbers = #tpu.dot_dimension_numbers<[2], [1], [1], [2], [0, 0, 0, 1, 1, 2], [0], [0]>} : vector<2x16x16xbf16>, vector<2x16x8xbf16>, vector<2x16x8xf32> -> vector<2x16x8xf32>
    "tpu.trace_stop"() : () -> ()
    %120 = vector.shape_cast %119 : vector<2x16x8xf32> to vector<32x8xf32>
    %121 = arith.truncf %120 : vector<32x8xf32> to vector<32x8xbf16>
    %c24 = arith.constant 24 : index
    %c0_44 = arith.constant 0 : index
    %122 = vector.load %arg10[%c24, %c0_44] : memref<32x128xbf16, #tpu.memory_space<vmem>>, vector<8x128xbf16>
    %cst_45 = arith.constant dense<0.000000e+00> : vector<32x128xf32>
    %123 = tpu.matmul %121, %122, %cst_45 {dimension_numbers = #tpu.dot_dimension_numbers<[1], [0], [0], [1], [0, 0, 1, 1], [], []>} : vector<32x8xbf16>, vector<8x128xbf16>, vector<32x128xf32> -> vector<32x128xf32>
    %124 = arith.addf %100, %123 : vector<32x128xf32>
    %125 = arith.addf %8, %124 : vector<32x128xf32>
    %c0_46 = arith.constant 0 : index
    %c0_47 = arith.constant 0 : index
    %126 = vector.load %arg11[%c0_46, %c0_47] : memref<1x128xf32, #tpu.memory_space<vmem>>, vector<1x128xf32>
    %127 = vector.broadcast %126 : vector<1x128xf32> to vector<32x128xf32>
    %128 = arith.addf %125, %127 : vector<32x128xf32>
    %129 = vector.shape_cast %128 : vector<32x128xf32> to vector<2x16x128xf32>
    %130 = arith.truncf %129 : vector<2x16x128xf32> to vector<2x16x128xbf16>
    %c0_48 = arith.constant 0 : index
    %c0_49 = arith.constant 0 : index
    %c0_50 = arith.constant 0 : index
    %131 = vector.load %arg12[%c0_48, %c0_49, %c0_50] : memref<2x16x128xbf16, #tpu.memory_space<vmem>>, vector<2x16x128xbf16>
    tpu.vector_store %arg12[%c0_48, %c0_49, %c0_50], %130 {strides = array<i32>} : memref<2x16x128xbf16, #tpu.memory_space<vmem>>, vector<2x16x128xbf16>,
    %cst_51 = arith.constant dense<0.000000e+00> : vector<128xf32>
    %132 = vector.multi_reduction <add>, %128, %cst_51 [0] : vector<32x128xf32> to vector<128xf32>
    %133 = vector.shape_cast %132 : vector<128xf32> to vector<1x128xf32>
    %cst_52 = arith.constant 3.125000e-02 : f32
    %134 = vector.broadcast %cst_52 : f32 to vector<1x128xf32>
    %135 = arith.mulf %133, %134 : vector<1x128xf32>
    %136 = vector.broadcast %135 : vector<1x128xf32> to vector<32x128xf32>
    %137 = arith.subf %128, %136 : vector<32x128xf32>
    %138 = arith.mulf %137, %137 : vector<32x128xf32>
    %cst_53 = arith.constant dense<0.000000e+00> : vector<128xf32>
    %139 = vector.multi_reduction <add>, %138, %cst_53 [0] : vector<32x128xf32> to vector<128xf32>
    %140 = vector.shape_cast %139 : vector<128xf32> to vector<1x128xf32>
    %141 = tpu.concatenate %133, %140 in 0 : vector<1x128xf32>, vector<1x128xf32> -> vector<2x128xf32>
    %c0_54 = arith.constant 0 : index
    %c0_55 = arith.constant 0 : index
    %c0_56 = arith.constant 0 : index
    %142 = vector.load %arg13[%c0_54, %c0_55, %c0_56] : memref<1x2x128xf32, #tpu.memory_space<vmem>>, vector<1x2x128xf32>
    %143 = vector.shape_cast %142 : vector<1x2x128xf32> to vector<2x128xf32>
    %144 = vector.shape_cast %141 : vector<2x128xf32> to vector<1x2x128xf32>
    tpu.vector_store %arg13[%c0_54, %c0_55, %c0_56], %144 {strides = array<i32>} : memref<1x2x128xf32, #tpu.memory_space<vmem>>, vector<1x2x128xf32>,
    return
  }
  func.func @transform_0(%arg0: i32) -> (i32, i32, i32) {
    %c0_i32 = arith.constant 0 : i32
    %c0_i32_0 = arith.constant 0 : i32
    %c0_i32_1 = arith.constant 0 : i32
    return %arg0, %c0_i32, %c0_i32_0 : i32, i32, i32
  }
  func.func @transform_1(%arg0: i32) -> (i32, i32) {
    %c0_i32 = arith.constant 0 : i32
    %c0_i32_0 = arith.constant 0 : i32
    %c0_i32_1 = arith.constant 0 : i32
    return %c0_i32, %c0_i32_0 : i32, i32
  }
  func.func @transform_2(%arg0: i32) -> (i32, i32) {
    %c0_i32 = arith.constant 0 : i32
    %c0_i32_0 = arith.constant 0 : i32
    %c0_i32_1 = arith.constant 0 : i32
    return %c0_i32, %c0_i32_0 : i32, i32
  }
  func.func @transform_3(%arg0: i32) -> (i32, i32) {
    %c0_i32 = arith.constant 0 : i32
    %c0_i32_0 = arith.constant 0 : i32
    %c0_i32_1 = arith.constant 0 : i32
    return %c0_i32, %c0_i32_0 : i32, i32
  }
  func.func @transform_4(%arg0: i32) -> (i32, i32) {
    %c0_i32 = arith.constant 0 : i32
    %c0_i32_0 = arith.constant 0 : i32
    %c0_i32_1 = arith.constant 0 : i32
    return %c0_i32, %c0_i32_0 : i32, i32
  }
  func.func @transform_5(%arg0: i32) -> (i32, i32) {
    %c0_i32 = arith.constant 0 : i32
    %c0_i32_0 = arith.constant 0 : i32
    %c0_i32_1 = arith.constant 0 : i32
    return %c0_i32, %c0_i32_0 : i32, i32
  }
  func.func @transform_6(%arg0: i32) -> (i32, i32) {
    %c0_i32 = arith.constant 0 : i32
    %c0_i32_0 = arith.constant 0 : i32
    %c0_i32_1 = arith.constant 0 : i32
    return %c0_i32, %c0_i32_0 : i32, i32
  }
  func.func @transform_7(%arg0: i32) -> (i32, i32) {
    %c0_i32 = arith.constant 0 : i32
    %c0_i32_0 = arith.constant 0 : i32
    %c0_i32_1 = arith.constant 0 : i32
    return %c0_i32, %c0_i32_0 : i32, i32
  }
  func.func @transform_8(%arg0: i32) -> (i32, i32) {
    %c0_i32 = arith.constant 0 : i32
    %c0_i32_0 = arith.constant 0 : i32
    %c0_i32_1 = arith.constant 0 : i32
    return %c0_i32, %c0_i32_0 : i32, i32
  }
  func.func @transform_9(%arg0: i32) -> (i32, i32) {
    %c0_i32 = arith.constant 0 : i32
    %c0_i32_0 = arith.constant 0 : i32
    %c0_i32_1 = arith.constant 0 : i32
    return %c0_i32, %c0_i32_0 : i32, i32
  }
  func.func @transform_10(%arg0: i32) -> (i32, i32) {
    %c0_i32 = arith.constant 0 : i32
    %c0_i32_0 = arith.constant 0 : i32
    %c0_i32_1 = arith.constant 0 : i32
    return %c0_i32, %c0_i32_0 : i32, i32
  }
  func.func @transform_11(%arg0: i32) -> (i32, i32, i32) {
    %c0_i32 = arith.constant 0 : i32
    %c0_i32_0 = arith.constant 0 : i32
    %c0_i32_1 = arith.constant 0 : i32
    return %arg0, %c0_i32, %c0_i32_0 : i32, i32, i32
  }
  func.func @transform_12(%arg0: i32) -> (i32, i32, i32) {
    %c0_i32 = arith.constant 0 : i32
    %c0_i32_0 = arith.constant 0 : i32
    %c0_i32_1 = arith.constant 0 : i32
    return %arg0, %c0_i32, %c0_i32_0 : i32, i32, i32
  }
}

module attributes {stable_mosaic.version = 11 : i64} {
  func.func @_proj_kernel(%arg0: i32, %arg1: memref<32x128xbf16, #tpu.memory_space<vmem>>, %arg2: memref<1x128xf32, #tpu.memory_space<vmem>>, %arg3: memref<1x128xf32, #tpu.memory_space<vmem>>, %arg4: memref<128x128xbf16, #tpu.memory_space<vmem>>, %arg5: memref<1x128xf32, #tpu.memory_space<vmem>>, %arg6: memref<32x128xf32, #tpu.memory_space<vmem>>) attributes {dimension_semantics = [#tpu.dimension_semantics<parallel>], iteration_bounds = array<i64: 1>, scalar_prefetch = 0 : i64, scratch_operands = 0 : i64, tpu.core_type = #tpu.core_type<tc>, window_params = [{transform_indices = @transform_0, window_bounds = array<i64: 32, 128>}, {pipeline_mode = #tpu.pipeline_mode<synchronous>, transform_indices = @transform_1, window_bounds = array<i64: 1, 128>}, {pipeline_mode = #tpu.pipeline_mode<synchronous>, transform_indices = @transform_2, window_bounds = array<i64: 1, 128>}, {pipeline_mode = #tpu.pipeline_mode<synchronous>, transform_indices = @transform_3, window_bounds = array<i64: 128, 128>}, {pipeline_mode = #tpu.pipeline_mode<synchronous>, transform_indices = @transform_4, window_bounds = array<i64: 1, 128>}, {transform_indices = @transform_5, window_bounds = array<i64: 32, 128>}]} {
    %c0 = arith.constant 0 : index
    %c0_0 = arith.constant 0 : index
    %0 = vector.load %arg1[%c0, %c0_0] : memref<32x128xbf16, #tpu.memory_space<vmem>>, vector<32x128xbf16>
    %1 = arith.extf %0 : vector<32x128xbf16> to vector<32x128xf32>
    %c0_1 = arith.constant 0 : index
    %c0_2 = arith.constant 0 : index
    %2 = vector.load %arg2[%c0_1, %c0_2] : memref<1x128xf32, #tpu.memory_space<vmem>>, vector<1x128xf32>
    %3 = vector.broadcast %2 : vector<1x128xf32> to vector<32x128xf32>
    %4 = arith.mulf %1, %3 : vector<32x128xf32>
    %c0_3 = arith.constant 0 : index
    %c0_4 = arith.constant 0 : index
    %5 = vector.load %arg3[%c0_3, %c0_4] : memref<1x128xf32, #tpu.memory_space<vmem>>, vector<1x128xf32>
    %6 = vector.broadcast %5 : vector<1x128xf32> to vector<32x128xf32>
    %7 = arith.addf %4, %6 : vector<32x128xf32>
    %8 = arith.truncf %7 : vector<32x128xf32> to vector<32x128xbf16>
    %c0_5 = arith.constant 0 : index
    %c0_6 = arith.constant 0 : index
    %9 = vector.load %arg4[%c0_5, %c0_6] : memref<128x128xbf16, #tpu.memory_space<vmem>>, vector<128x128xbf16>
    %cst = arith.constant dense<0.000000e+00> : vector<32x128xf32>
    %10 = tpu.matmul %8, %9, %cst {dimension_numbers = #tpu.dot_dimension_numbers<[1], [0], [0], [1], [0, 0, 1, 1], [], []>} : vector<32x128xbf16>, vector<128x128xbf16>, vector<32x128xf32> -> vector<32x128xf32>
    %c0_7 = arith.constant 0 : index
    %c0_8 = arith.constant 0 : index
    %11 = vector.load %arg5[%c0_7, %c0_8] : memref<1x128xf32, #tpu.memory_space<vmem>>, vector<1x128xf32>
    %12 = vector.broadcast %11 : vector<1x128xf32> to vector<32x128xf32>
    %13 = arith.addf %10, %12 : vector<32x128xf32>
    %c0_9 = arith.constant 0 : index
    %c0_10 = arith.constant 0 : index
    %14 = vector.load %arg6[%c0_9, %c0_10] : memref<32x128xf32, #tpu.memory_space<vmem>>, vector<32x128xf32>
    tpu.vector_store %arg6[%c0_9, %c0_10], %13 {strides = array<i32>} : memref<32x128xf32, #tpu.memory_space<vmem>>, vector<32x128xf32>,
    return
  }
  func.func @transform_0(%arg0: i32) -> (i32, i32) {
    %c0_i32 = arith.constant 0 : i32
    %c0_i32_0 = arith.constant 0 : i32
    return %arg0, %c0_i32 : i32, i32
  }
  func.func @transform_1(%arg0: i32) -> (i32, i32) {
    %c0_i32 = arith.constant 0 : i32
    %c0_i32_0 = arith.constant 0 : i32
    %c0_i32_1 = arith.constant 0 : i32
    return %c0_i32, %c0_i32_0 : i32, i32
  }
  func.func @transform_2(%arg0: i32) -> (i32, i32) {
    %c0_i32 = arith.constant 0 : i32
    %c0_i32_0 = arith.constant 0 : i32
    %c0_i32_1 = arith.constant 0 : i32
    return %c0_i32, %c0_i32_0 : i32, i32
  }
  func.func @transform_3(%arg0: i32) -> (i32, i32) {
    %c0_i32 = arith.constant 0 : i32
    %c0_i32_0 = arith.constant 0 : i32
    %c0_i32_1 = arith.constant 0 : i32
    return %c0_i32, %c0_i32_0 : i32, i32
  }
  func.func @transform_4(%arg0: i32) -> (i32, i32) {
    %c0_i32 = arith.constant 0 : i32
    %c0_i32_0 = arith.constant 0 : i32
    %c0_i32_1 = arith.constant 0 : i32
    return %c0_i32, %c0_i32_0 : i32, i32
  }
  func.func @transform_5(%arg0: i32) -> (i32, i32) {
    %c0_i32 = arith.constant 0 : i32
    %c0_i32_0 = arith.constant 0 : i32
    return %arg0, %c0_i32 : i32, i32
  }
}

module attributes {stable_mosaic.version = 11 : i64} {
  func.func @_ffn_kernel(%arg0: i32, %arg1: memref<32x128xbf16, #tpu.memory_space<vmem>>, %arg2: memref<1x128xf32, #tpu.memory_space<vmem>>, %arg3: memref<1x128xf32, #tpu.memory_space<vmem>>, %arg4: memref<128x128xbf16, #tpu.memory_space<vmem>>, %arg5: memref<1x128xf32, #tpu.memory_space<vmem>>, %arg6: memref<128x128xbf16, #tpu.memory_space<vmem>>, %arg7: memref<1x128xf32, #tpu.memory_space<vmem>>, %arg8: memref<32x128xbf16, #tpu.memory_space<vmem>>, %arg9: memref<1x2x128xf32, #tpu.memory_space<vmem>>) attributes {dimension_semantics = [#tpu.dimension_semantics<parallel>], iteration_bounds = array<i64: 1>, scalar_prefetch = 0 : i64, scratch_operands = 0 : i64, tpu.core_type = #tpu.core_type<tc>, window_params = [{transform_indices = @transform_0, window_bounds = array<i64: 32, 128>}, {pipeline_mode = #tpu.pipeline_mode<synchronous>, transform_indices = @transform_1, window_bounds = array<i64: 1, 128>}, {pipeline_mode = #tpu.pipeline_mode<synchronous>, transform_indices = @transform_2, window_bounds = array<i64: 1, 128>}, {pipeline_mode = #tpu.pipeline_mode<synchronous>, transform_indices = @transform_3, window_bounds = array<i64: 128, 128>}, {pipeline_mode = #tpu.pipeline_mode<synchronous>, transform_indices = @transform_4, window_bounds = array<i64: 1, 128>}, {pipeline_mode = #tpu.pipeline_mode<synchronous>, transform_indices = @transform_5, window_bounds = array<i64: 128, 128>}, {pipeline_mode = #tpu.pipeline_mode<synchronous>, transform_indices = @transform_6, window_bounds = array<i64: 1, 128>}, {transform_indices = @transform_7, window_bounds = array<i64: 32, 128>}, {transform_indices = @transform_8, window_bounds = array<i64: 1, 2, 128>}]} {
    %c0 = arith.constant 0 : index
    %c0_0 = arith.constant 0 : index
    %0 = vector.load %arg1[%c0, %c0_0] : memref<32x128xbf16, #tpu.memory_space<vmem>>, vector<32x128xbf16>
    %1 = arith.extf %0 : vector<32x128xbf16> to vector<32x128xf32>
    %c0_1 = arith.constant 0 : index
    %c0_2 = arith.constant 0 : index
    %2 = vector.load %arg2[%c0_1, %c0_2] : memref<1x128xf32, #tpu.memory_space<vmem>>, vector<1x128xf32>
    %3 = vector.broadcast %2 : vector<1x128xf32> to vector<32x128xf32>
    %4 = arith.mulf %1, %3 : vector<32x128xf32>
    %c0_3 = arith.constant 0 : index
    %c0_4 = arith.constant 0 : index
    %5 = vector.load %arg3[%c0_3, %c0_4] : memref<1x128xf32, #tpu.memory_space<vmem>>, vector<1x128xf32>
    %6 = vector.broadcast %5 : vector<1x128xf32> to vector<32x128xf32>
    %7 = arith.addf %4, %6 : vector<32x128xf32>
    %8 = arith.truncf %7 : vector<32x128xf32> to vector<32x128xbf16>
    %c0_5 = arith.constant 0 : index
    %c0_6 = arith.constant 0 : index
    %9 = vector.load %arg4[%c0_5, %c0_6] : memref<128x128xbf16, #tpu.memory_space<vmem>>, vector<128x128xbf16>
    %cst = arith.constant dense<0.000000e+00> : vector<32x128xf32>
    %10 = tpu.matmul %8, %9, %cst {dimension_numbers = #tpu.dot_dimension_numbers<[1], [0], [0], [1], [0, 0, 1, 1], [], []>} : vector<32x128xbf16>, vector<128x128xbf16>, vector<32x128xf32> -> vector<32x128xf32>
    %c0_7 = arith.constant 0 : index
    %c0_8 = arith.constant 0 : index
    %11 = vector.load %arg5[%c0_7, %c0_8] : memref<1x128xf32, #tpu.memory_space<vmem>>, vector<1x128xf32>
    %12 = vector.broadcast %11 : vector<1x128xf32> to vector<32x128xf32>
    %13 = arith.addf %10, %12 : vector<32x128xf32>
    %14 = arith.mulf %13, %13 : vector<32x128xf32>
    %15 = arith.mulf %13, %14 : vector<32x128xf32>
    %cst_9 = arith.constant 4.471500e-02 : f32
    %16 = vector.broadcast %cst_9 : f32 to vector<32x128xf32>
    %17 = arith.mulf %16, %15 : vector<32x128xf32>
    %18 = arith.addf %13, %17 : vector<32x128xf32>
    %cst_10 = arith.constant 0.797884583 : f32
    %19 = vector.broadcast %cst_10 : f32 to vector<32x128xf32>
    %20 = arith.mulf %19, %18 : vector<32x128xf32>
    %21 = math.tanh %20 : vector<32x128xf32>
    %cst_11 = arith.constant 1.000000e+00 : f32
    %22 = vector.broadcast %cst_11 : f32 to vector<32x128xf32>
    %23 = arith.addf %22, %21 : vector<32x128xf32>
    %cst_12 = arith.constant 5.000000e-01 : f32
    %24 = vector.broadcast %cst_12 : f32 to vector<32x128xf32>
    %25 = arith.mulf %24, %23 : vector<32x128xf32>
    %26 = arith.mulf %13, %25 : vector<32x128xf32>
    %27 = arith.truncf %26 : vector<32x128xf32> to vector<32x128xbf16>
    %c0_13 = arith.constant 0 : index
    %c0_14 = arith.constant 0 : index
    %28 = vector.load %arg6[%c0_13, %c0_14] : memref<128x128xbf16, #tpu.memory_space<vmem>>, vector<128x128xbf16>
    %cst_15 = arith.constant dense<0.000000e+00> : vector<32x128xf32>
    %29 = tpu.matmul %27, %28, %cst_15 {dimension_numbers = #tpu.dot_dimension_numbers<[1], [0], [0], [1], [0, 0, 1, 1], [], []>} : vector<32x128xbf16>, vector<128x128xbf16>, vector<32x128xf32> -> vector<32x128xf32>
    %c0_16 = arith.constant 0 : index
    %c0_17 = arith.constant 0 : index
    %30 = vector.load %arg7[%c0_16, %c0_17] : memref<1x128xf32, #tpu.memory_space<vmem>>, vector<1x128xf32>
    %31 = vector.broadcast %30 : vector<1x128xf32> to vector<32x128xf32>
    %32 = arith.addf %29, %31 : vector<32x128xf32>
    %33 = arith.addf %7, %32 : vector<32x128xf32>
    %34 = arith.truncf %33 : vector<32x128xf32> to vector<32x128xbf16>
    %c0_18 = arith.constant 0 : index
    %c0_19 = arith.constant 0 : index
    %35 = vector.load %arg8[%c0_18, %c0_19] : memref<32x128xbf16, #tpu.memory_space<vmem>>, vector<32x128xbf16>
    tpu.vector_store %arg8[%c0_18, %c0_19], %34 {strides = array<i32>} : memref<32x128xbf16, #tpu.memory_space<vmem>>, vector<32x128xbf16>,
    %cst_20 = arith.constant dense<0.000000e+00> : vector<128xf32>
    %36 = vector.multi_reduction <add>, %33, %cst_20 [0] : vector<32x128xf32> to vector<128xf32>
    %37 = vector.shape_cast %36 : vector<128xf32> to vector<1x128xf32>
    %cst_21 = arith.constant 3.125000e-02 : f32
    %38 = vector.broadcast %cst_21 : f32 to vector<1x128xf32>
    %39 = arith.mulf %37, %38 : vector<1x128xf32>
    %40 = vector.broadcast %39 : vector<1x128xf32> to vector<32x128xf32>
    %41 = arith.subf %33, %40 : vector<32x128xf32>
    %42 = arith.mulf %41, %41 : vector<32x128xf32>
    %cst_22 = arith.constant dense<0.000000e+00> : vector<128xf32>
    %43 = vector.multi_reduction <add>, %42, %cst_22 [0] : vector<32x128xf32> to vector<128xf32>
    %44 = vector.shape_cast %43 : vector<128xf32> to vector<1x128xf32>
    %45 = tpu.concatenate %37, %44 in 0 : vector<1x128xf32>, vector<1x128xf32> -> vector<2x128xf32>
    %c0_23 = arith.constant 0 : index
    %c0_24 = arith.constant 0 : index
    %c0_25 = arith.constant 0 : index
    %46 = vector.load %arg9[%c0_23, %c0_24, %c0_25] : memref<1x2x128xf32, #tpu.memory_space<vmem>>, vector<1x2x128xf32>
    %47 = vector.shape_cast %46 : vector<1x2x128xf32> to vector<2x128xf32>
    %48 = vector.shape_cast %45 : vector<2x128xf32> to vector<1x2x128xf32>
    tpu.vector_store %arg9[%c0_23, %c0_24, %c0_25], %48 {strides = array<i32>} : memref<1x2x128xf32, #tpu.memory_space<vmem>>, vector<1x2x128xf32>,
    return
  }
  func.func @transform_0(%arg0: i32) -> (i32, i32) {
    %c0_i32 = arith.constant 0 : i32
    %c0_i32_0 = arith.constant 0 : i32
    return %arg0, %c0_i32 : i32, i32
  }
  func.func @transform_1(%arg0: i32) -> (i32, i32) {
    %c0_i32 = arith.constant 0 : i32
    %c0_i32_0 = arith.constant 0 : i32
    %c0_i32_1 = arith.constant 0 : i32
    return %c0_i32, %c0_i32_0 : i32, i32
  }
  func.func @transform_2(%arg0: i32) -> (i32, i32) {
    %c0_i32 = arith.constant 0 : i32
    %c0_i32_0 = arith.constant 0 : i32
    %c0_i32_1 = arith.constant 0 : i32
    return %c0_i32, %c0_i32_0 : i32, i32
  }
  func.func @transform_3(%arg0: i32) -> (i32, i32) {
    %c0_i32 = arith.constant 0 : i32
    %c0_i32_0 = arith.constant 0 : i32
    %c0_i32_1 = arith.constant 0 : i32
    return %c0_i32, %c0_i32_0 : i32, i32
  }
  func.func @transform_4(%arg0: i32) -> (i32, i32) {
    %c0_i32 = arith.constant 0 : i32
    %c0_i32_0 = arith.constant 0 : i32
    %c0_i32_1 = arith.constant 0 : i32
    return %c0_i32, %c0_i32_0 : i32, i32
  }
  func.func @transform_5(%arg0: i32) -> (i32, i32) {
    %c0_i32 = arith.constant 0 : i32
    %c0_i32_0 = arith.constant 0 : i32
    %c0_i32_1 = arith.constant 0 : i32
    return %c0_i32, %c0_i32_0 : i32, i32
  }
  func.func @transform_6(%arg0: i32) -> (i32, i32) {
    %c0_i32 = arith.constant 0 : i32
    %c0_i32_0 = arith.constant 0 : i32
    %c0_i32_1 = arith.constant 0 : i32
    return %c0_i32, %c0_i32_0 : i32, i32
  }
  func.func @transform_7(%arg0: i32) -> (i32, i32) {
    %c0_i32 = arith.constant 0 : i32
    %c0_i32_0 = arith.constant 0 : i32
    return %arg0, %c0_i32 : i32, i32
  }
  func.func @transform_8(%arg0: i32) -> (i32, i32, i32) {
    %c0_i32 = arith.constant 0 : i32
    %c0_i32_0 = arith.constant 0 : i32
    %c0_i32_1 = arith.constant 0 : i32
    return %arg0, %c0_i32, %c0_i32_0 : i32, i32, i32
  }
}

</mosaic_0001>

<bundles_post_ra>
// kernel: trans_encoder_forward.6
= control target key start
LH: loop header
LB: loop body
LE: loop exit
PB: predicated region body
PF: predicated region fallthrough
CT: control target
= control target key end

     0   :  { %vm305_vm0 = vcmask 1040384   ;;  %s580_s3 = inlined_call_operand.vmem [shape: bf16[128,128], index: 3, kind: input, shape index: {}]   ;;  %s581_s1 = inlined_call_operand.vmem [shape: f32[1,128], index: 1, kind: input, shape index: {}]   ;;  %s582_s2 = inlined_call_operand.vmem [shape: f32[1,128], index: 2, kind: input, shape index: {}]   ;;  %s583_s4 = inlined_call_operand.vmem [shape: f32[1,128], index: 4, kind: input, shape index: {}]   ;;  %s584_s0 = inlined_call_operand.vmem [shape: bf16[32,128], index: 0, kind: input, shape index: {}, may-alias: {0,7}]   ;;  %s585_s6 = inlined_call_operand.vmem [shape: f32[1,128], index: 6, kind: input, shape index: {}]   ;;  %s586_s5 = inlined_call_operand.vmem [shape: bf16[128,128], index: 5, kind: input, shape index: {}]   ;;  %s587_s7 = inlined_call_operand.vmem [shape: bf16[32,128], index: 7, kind: output, shape index: {0}, may-alias: {0,7}]   ;;  %s588_s8 = inlined_call_operand.vmem [shape: f32[1,2,128], index: 8, kind: output, shape index: {1}]  }
   0x1   :  { %v387_v0 = vld [vmem:[%s580_s3 + $0x38] sm:$0xff]  ;;  %v386_v1 = vld [vmem:[%s580_s3 + $0x30] sm:$0xff]  ;;  %v385_v2 = vld [vmem:[%s580_s3 + $0x28] sm:$0xff] }
   0x2   :  { %122 = vmatpush.bf16.msra.mxu0 %v387_v0  ;;  %416 = vmatpush.bf16.msra.mxu2 %v387_v0  ;;  %v384_v3 = vld [vmem:[%s580_s3 + $0x20] sm:$0xff]  ;;  %v383_v4 = vld [vmem:[%s580_s3 + $0x18] sm:$0xff]  ;;  %v414_v6 = vld [vmem:[%s584_s0 + $0x8] sm:$0xff]  }
   0x3   :  { %v397_v5 = vld [vmem:[%s584_s0] sm:$0xff]   ;;  %v402_v10 = vunpack.c.l.bf16 %v414_v6  ;;  %v403_v11 = vunpack.c.h.bf16 %v414_v6  ;;  %v382_v12 = vld [vmem:[%s580_s3 + $0x10] sm:$0xff]  ;;  %v381_v18 = vld [vmem:[%s580_s3 + $0x8] sm:$0xff] }
   0x4   :  { %v398_v7 = vunpack.c.l.bf16 %v397_v5  ;;  %v399_v8 = vunpack.c.h.bf16 %v397_v5  ;;  %v432_v9 = vld [vmem:[%s581_s1] ss:$0 sm:$0xff]  ;;  %v395_v26 = vld [vmem:[%s586_s5 + $0x38] sm:$0xff]  ;;  %v394_v27 = vld [vmem:[%s586_s5 + $0x30] sm:$0xff] }
   0x5   :  { %v433_v15 = vld [vmem:[%s582_s2] ss:$0 sm:$0xff]  ;;  %v42_v16 = vmul.f32 %v432_v9, %v402_v10  ;;  %v43_v17 = vmul.f32 %v432_v9, %v403_v11  ;;  %247 = vmatpush.bf16.msra.mxu1 %v395_v26  ;;  %424 = vmatpush.bf16.msra.mxu3 %v395_v26  ;;  %v393_v28 = vld [vmem:[%s586_s5 + $0x28] sm:$0xff]  ;;  %v391_v30 = vld [vmem:[%s586_s5 + $0x18] sm:$0xff] }
   0x6   :  { %123 = vmatpush.bf16.msra.mxu0 %v386_v1  ;;  %417 = vmatpush.bf16.msra.mxu2 %v386_v1  ;;  %v40_v13 = vmul.f32 %v432_v9, %v398_v7  ;;  %v41_v14 = vmul.f32 %v432_v9, %v399_v8  ;;  %v380_v23 = vld [vmem:[%s580_s3] sm:$0xff]  ;;  %v390_v31 = vld [vmem:[%s586_s5 + $0x10] sm:$0xff]  ;;  %v389_v32 = vld [vmem:[%s586_s5 + $0x8] sm:$0xff] }
   0x7   :  { %v526_v21 = vadd.f32 %v433_v15, %v42_v16  ;;  %v528_v22 = vadd.f32 %v433_v15, %v43_v17  ;;  %v392_v29 = vld [vmem:[%s586_s5 + $0x20] sm:$0xff] }
   0x8   :  { %v522_v19 = vadd.f32 %v433_v15, %v40_v13  ;;  %v524_v20 = vadd.f32 %v433_v15, %v41_v14  ;;  %v434_v33 = vld [vmem:[%s583_s4] ss:$0 sm:$0xff] }
   0x9   :  { %v53_v25 = vpack.c.bf16 %v528_v22, %v526_v21  ;;  %248 = vmatpush.bf16.msra.mxu1 %v394_v27  ;;  %425 = vmatpush.bf16.msra.mxu3 %v394_v27  ;;  %v388_v34 = vld [vmem:[%s586_s5] sm:$0xff] }
   0xa   :  { %124 = vmatpush.bf16.msra.mxu0 %v385_v2  ;;  %418 = vmatpush.bf16.msra.mxu2 %v385_v2  ;;  %v52_v24 = vpack.c.bf16 %v524_v20, %v522_v19 }
   0xd   :  { %249 = vmatpush.bf16.msra.mxu1 %v393_v28  ;;  %426 = vmatpush.bf16.msra.mxu3 %v393_v28 }
   0xe   :  { %125 = vmatpush.bf16.msra.mxu0 %v384_v3  ;;  %419 = vmatpush.bf16.msra.mxu2 %v384_v3 }
  0x11   :  { %250 = vmatpush.bf16.msra.mxu1 %v392_v29  ;;  %427 = vmatpush.bf16.msra.mxu3 %v392_v29 }
  0x12   :  { %126 = vmatpush.bf16.msra.mxu0 %v383_v4  ;;  %420 = vmatpush.bf16.msra.mxu2 %v383_v4 }
  0x15   :  { %251 = vmatpush.bf16.msra.mxu1 %v391_v30  ;;  %428 = vmatpush.bf16.msra.mxu3 %v391_v30 }
  0x16   :  { %127 = vmatpush.bf16.msra.mxu0 %v382_v12  ;;  %421 = vmatpush.bf16.msra.mxu2 %v382_v12 }
  0x19   :  { %252 = vmatpush.bf16.msra.mxu1 %v390_v31  ;;  %429 = vmatpush.bf16.msra.mxu3 %v390_v31 }
  0x1a   :  { %128 = vmatpush.bf16.msra.mxu0 %v381_v18  ;;  %422 = vmatpush.bf16.msra.mxu2 %v381_v18  ;;  %v435_v18 = vld [vmem:[%s585_s6] ss:$0 sm:$0xff] }
  0x1d   :  { %253 = vmatpush.bf16.msra.mxu1 %v389_v32  ;;  %430 = vmatpush.bf16.msra.mxu3 %v389_v32 }
  0x1e   :  { %129 = vmatpush.bf16.msra.mxu0 %v380_v23  ;;  %423 = vmatpush.bf16.msra.mxu2 %v380_v23 }
  0x21   :  { %130 = vmatmul.bf16.vlgmr.msra.gmra.mxu0 %v52_v24  ;;  %135 = vmatmul.bf16.vlgmr.msra.gmra.mxu2 %v53_v25 }
  0x22   :  { %254 = vmatpush.bf16.msra.mxu1 %v388_v34  ;;  %431 = vmatpush.bf16.msra.mxu3 %v388_v34 }
  0x9e   :  { %v131_v35 = vpop.f32.mrf.mxu0 }
  0x9f   :  { %v132_v36 = vadd.f32 %v434_v33, %v131_v35 }
  0xa1   :  { %v141_v37 = vmul.f32 %v132_v36, %v132_v36 }
  0xa3   :  { %v145_v38 = vmul.f32 %v141_v37, %v132_v36 }
  0xa4   :  { %v136_v39 = vpop.f32.mrf.mxu2 }
  0xa5   :  { %v149_v40 = vmul.f32 0.044715, %v145_v38  ;;  %v137_v41 = vadd.f32 %v434_v33, %v136_v39 }
  0xa6   :  { %v133_v42 = vpop.f32.mrf.mxu0 }
  0xa7   :  { %v153_v43 = vadd.f32 %v149_v40, %v132_v36  ;;  %v143_v44 = vmul.f32 %v137_v41, %v137_v41  ;;  %v134_v45 = vadd.f32 %v434_v33, %v133_v42 }
  0xa9   :  { %v147_v46 = vmul.f32 %v143_v44, %v137_v41  ;;  %v142_v47 = vmul.f32 %v134_v45, %v134_v45  ;;  %v157_v48 = vmul.f32 0.7978846, %v153_v43 }
  0xab   :  { %v151_v49 = vmul.f32 0.044715, %v147_v46  ;;  %v146_v50 = vmul.f32 %v142_v47, %v134_v45  ;;  %436 = vtanh.f32 %v157_v48 }
  0xac   :  { %v138_v51 = vpop.f32.mrf.mxu2 }
  0xad   :  { %v155_v52 = vadd.f32 %v151_v49, %v137_v41  ;;  %v150_v53 = vmul.f32 0.044715, %v146_v50  ;;  %v139_v54 = vadd.f32 %v434_v33, %v138_v51 }
  0xaf   :  { %v154_v55 = vadd.f32 %v150_v53, %v134_v45  ;;  %v144_v56 = vmul.f32 %v139_v54, %v139_v54  ;;  %v159_v57 = vmul.f32 0.7978846, %v155_v52 }
  0xb1   :  { %v148_v58 = vmul.f32 %v144_v56, %v139_v54  ;;  %v158_v59 = vmul.f32 0.7978846, %v154_v55  ;;  %438 = vtanh.f32 %v159_v57  ;;  %v437_v60 = vpop.eup %436 }
  0xb2   :  { %v165_v63 = vadd.f32 1.0, %v437_v60 }
  0xb3   :  { %v152_v61 = vmul.f32 0.044715, %v148_v58  ;;  %440 = vtanh.f32 %v158_v59 }
  0xb4   :  { %v169_v4 = vmul.f32 0.5, %v165_v63 }
  0xb5   :  { %v156_v62 = vadd.f32 %v152_v61, %v139_v54 }
  0xb6   :  { %v173_v7 = vmul.f32 %v169_v4, %v132_v36 }
  0xb7   :  { %v160_v0 = vmul.f32 0.7978846, %v156_v62  ;;  %v439_v1 = vpop.eup %438 }
  0xb8   :  { %v167_v6 = vadd.f32 1.0, %v439_v1 }
  0xb9   :  { %v441_v2 = vpop.eup %440  ;;  %442 = vtanh.f32 %v160_v0 }
  0xba   :  { %v166_v3 = vadd.f32 1.0, %v441_v2  ;;  %v171_v12 = vmul.f32 0.5, %v167_v6 }
  0xbc   :  { %v170_v5 = vmul.f32 0.5, %v166_v3  ;;  %v175_v14 = vmul.f32 %v171_v12, %v137_v41 }
  0xbe   :  { %v174_v8 = vmul.f32 %v170_v5, %v134_v45 }
  0xbf   :  { %v443_v9 = vpop.eup %442 }
  0xc0   :  { %v177_v10 = vpack.c.bf16 %v174_v8, %v173_v7  ;;  %v168_v11 = vadd.f32 1.0, %v443_v9 }
  0xc2   :  { %255 = vmatmul.bf16.vlgmr.msra.gmra.mxu1 %v177_v10  ;;  %v172_v13 = vmul.f32 0.5, %v168_v11 }
  0xc4   :  { %v176_v15 = vmul.f32 %v172_v13, %v139_v54 }
  0xc6   :  { %v178_v16 = vpack.c.bf16 %v176_v15, %v175_v14 }
  0xc8   :  { %260 = vmatmul.bf16.vlgmr.msra.gmra.mxu3 %v178_v16 }
 0x13f   :  { %v256_v17 = vpop.f32.mrf.mxu1 }
 0x140   :  { %v257_v23 = vadd.f32 %v435_v18, %v256_v17 }
 0x142   :  { %v266_v26 = vadd.f32 %v257_v23, %v522_v19 }
 0x147   :  { %v258_v24 = vpop.f32.mrf.mxu1 }
 0x148   :  { %v259_v25 = vadd.f32 %v435_v18, %v258_v24 }
 0x14a   :  { %v267_v27 = vadd.f32 %v259_v25, %v524_v20 }
 0x14b   :  { %v261_v28 = vpop.f32.mrf.mxu3 }
 0x14c   :  { %v407_v29 = vpack.c.bf16 %v267_v27, %v266_v26  ;;  %v262_v30 = vadd.f32 %v435_v18, %v261_v28  ;;  %v278_v33 = vadd.f32 %v267_v27, %v266_v26 }
 0x14e   :  { %408 = vst [vmem:[%s587_s7] sm:$0xff] %v407_v29   ;;  %v268_v31 = vadd.f32 %v262_v30, %v526_v21 }
 0x150   :  { %v279_v35 = vadd.f32 %v278_v33, %v268_v31 }
 0x153   :  { %v263_v32 = vpop.f32.mrf.mxu3 }
 0x154   :  { %v264_v34 = vadd.f32 %v435_v18, %v263_v32 }
 0x156   :  { %v269_v36 = vadd.f32 %v264_v34, %v528_v22 }
 0x158   :  { %v412_v37 = vpack.c.bf16 %v269_v36, %v268_v31  ;;  %v280_v38 = vadd.f32 %v279_v35, %v269_v36 }
 0x15a   :  { %415 = vst [vmem:[%s587_s7 + $0x8] sm:$0xff] %v412_v37   ;;  %v281_v19 = vrot.slane %v280_v38, 4 }
 0x15c   :  { %v282_v20 = vadd.f32 %v281_v19, %v280_v38 }
 0x15e   :  { %v283_v39 = vrot.slane %v282_v20, 2 }
 0x160   :  { %v284_v40 = vadd.f32 %v283_v39, %v282_v20 }
 0x162   :  { %v285_v41 = vrot.slane %v284_v40, 1 }
 0x164   :  { %v286_v42 = vadd.f32 %v285_v41, %v284_v40 }
 0x166   :  { %v287_v43 = vmul.f32 0.03125, %v286_v42 }
 0x168   :  { %v288_v21 = vsub.f32 %v266_v26, %v287_v43  ;;  %v289_v44 = vsub.f32 %v267_v27, %v287_v43  ;;  %v290_v45 = vsub.f32 %v268_v31, %v287_v43  ;;  %v291_v46 = vsub.f32 %v269_v36, %v287_v43 }
 0x16a   :  { %v292_v47 = vmul.f32 %v288_v21, %v288_v21  ;;  %v293_v48 = vmul.f32 %v289_v44, %v289_v44  ;;  %v294_v22 = vmul.f32 %v290_v45, %v290_v45  ;;  %v295_v50 = vmul.f32 %v291_v46, %v291_v46 }
 0x16c   :  { %v296_v49 = vadd.f32 %v293_v48, %v292_v47 }
 0x16e   :  { %v297_v51 = vadd.f32 %v296_v49, %v294_v22 }
 0x170   :  { %v298_v52 = vadd.f32 %v297_v51, %v295_v50 }
 0x172   :  { %v299_v53 = vrot.slane %v298_v52, 4 }
 0x174   :  { %v300_v54 = vadd.f32 %v299_v53, %v298_v52 }
 0x176   :  { %v301_v55 = vrot.slane %v300_v54, 2 }
 0x178   :  { %v302_v56 = vadd.f32 %v301_v55, %v300_v54 }
 0x17a   :  { %v303_v57 = vrot.slane %v302_v56, 1 }
 0x17c   :  { %v304_v58 = vadd.f32 %v303_v57, %v302_v56 }
 0x17e   :  { %v306_v59 = vsel %vm305_vm0, %v286_v42, %v304_v58 }
 0x17f   :  { %307 = vst [vmem:[%s588_s8] sm:$0x3] %v306_v59 }

// kernel: trans_encoder_forward.9
= control target key start
LH: loop header
LB: loop body
LE: loop exit
PB: predicated region body
PF: predicated region fallthrough
CT: control target
= control target key end

     0   :  { %s282_s3 = inlined_call_operand.vmem [shape: bf16[128,128], index: 3, kind: input, shape index: {}]   ;;  %s283_s1 = inlined_call_operand.vmem [shape: f32[1,128], index: 1, kind: input, shape index: {}]   ;;  %s284_s2 = inlined_call_operand.vmem [shape: f32[1,128], index: 2, kind: input, shape index: {}]   ;;  %s285_s4 = inlined_call_operand.vmem [shape: f32[1,128], index: 4, kind: input, shape index: {}]   ;;  %s286_s0 = inlined_call_operand.vmem [shape: bf16[32,128], index: 0, kind: input, shape index: {}]   ;;  %s287_s5 = inlined_call_operand.vmem [shape: f32[32,128], index: 5, kind: output, shape index: {}]  }
   0x1   :  { %v180_v0 = vld [vmem:[%s282_s3 + $0x38] sm:$0xff]  ;;  %v179_v1 = vld [vmem:[%s282_s3 + $0x30] sm:$0xff]  ;;  %v178_v2 = vld [vmem:[%s282_s3 + $0x28] sm:$0xff] }
   0x2   :  { %114 = vmatpush.bf16.msra.mxu0 %v180_v0  ;;  %190 = vmatpush.bf16.msra.mxu1 %v180_v0  ;;  %v177_v3 = vld [vmem:[%s282_s3 + $0x20] sm:$0xff]  ;;  %v176_v4 = vld [vmem:[%s282_s3 + $0x18] sm:$0xff]  ;;  %v189_v6 = vld [vmem:[%s286_s0 + $0x8] sm:$0xff]  }
   0x3   :  { %v182_v5 = vld [vmem:[%s286_s0] sm:$0xff]   ;;  %v187_v10 = vunpack.c.l.bf16 %v189_v6  ;;  %v188_v11 = vunpack.c.h.bf16 %v189_v6  ;;  %v175_v12 = vld [vmem:[%s282_s3 + $0x10] sm:$0xff]  ;;  %v174_v18 = vld [vmem:[%s282_s3 + $0x8] sm:$0xff] }
   0x4   :  { %v183_v7 = vunpack.c.l.bf16 %v182_v5  ;;  %v184_v8 = vunpack.c.h.bf16 %v182_v5  ;;  %v198_v9 = vld [vmem:[%s283_s1] ss:$0 sm:$0xff] }
   0x5   :  { %v199_v15 = vld [vmem:[%s284_s2] ss:$0 sm:$0xff]  ;;  %v34_v16 = vmul.f32 %v198_v9, %v187_v10  ;;  %v35_v17 = vmul.f32 %v198_v9, %v188_v11 }
   0x6   :  { %115 = vmatpush.bf16.msra.mxu0 %v179_v1  ;;  %191 = vmatpush.bf16.msra.mxu1 %v179_v1  ;;  %v32_v13 = vmul.f32 %v198_v9, %v183_v7  ;;  %v33_v14 = vmul.f32 %v198_v9, %v184_v8  ;;  %v173_v23 = vld [vmem:[%s282_s3] sm:$0xff] }
   0x7   :  { %v42_v21 = vadd.f32 %v199_v15, %v34_v16  ;;  %v43_v22 = vadd.f32 %v199_v15, %v35_v17  ;;  %v200_v26 = vld [vmem:[%s285_s4] ss:$0 sm:$0xff] }
   0x8   :  { %v40_v19 = vadd.f32 %v199_v15, %v32_v13  ;;  %v41_v20 = vadd.f32 %v199_v15, %v33_v14 }
   0x9   :  { %v45_v25 = vpack.c.bf16 %v43_v22, %v42_v21 }
   0xa   :  { %116 = vmatpush.bf16.msra.mxu0 %v178_v2  ;;  %192 = vmatpush.bf16.msra.mxu1 %v178_v2  ;;  %v44_v24 = vpack.c.bf16 %v41_v20, %v40_v19 }
   0xe   :  { %117 = vmatpush.bf16.msra.mxu0 %v177_v3  ;;  %193 = vmatpush.bf16.msra.mxu1 %v177_v3 }
  0x12   :  { %118 = vmatpush.bf16.msra.mxu0 %v176_v4  ;;  %194 = vmatpush.bf16.msra.mxu1 %v176_v4 }
  0x16   :  { %119 = vmatpush.bf16.msra.mxu0 %v175_v12  ;;  %195 = vmatpush.bf16.msra.mxu1 %v175_v12 }
  0x1a   :  { %120 = vmatpush.bf16.msra.mxu0 %v174_v18  ;;  %196 = vmatpush.bf16.msra.mxu1 %v174_v18 }
  0x1e   :  { %121 = vmatpush.bf16.msra.mxu0 %v173_v23  ;;  %197 = vmatpush.bf16.msra.mxu1 %v173_v23 }
  0x21   :  { %122 = vmatmul.bf16.vlgmr.msra.gmra.mxu0 %v44_v24  ;;  %127 = vmatmul.bf16.vlgmr.msra.gmra.mxu1 %v45_v25 }
  0x9e   :  { %v123_v27 = vpop.f32.mrf.mxu0  ;;  %v128_v28 = vpop.f32.mrf.mxu1 }
  0x9f   :  { %v124_v29 = vadd.f32 %v200_v26, %v123_v27  ;;  %v129_v30 = vadd.f32 %v200_v26, %v128_v28 }
  0xa1   :  { %133 = vst [vmem:[%s287_s5] sm:$0xff] %v124_v29 }
  0xa2   :  { %135 = vst [vmem:[%s287_s5 + $0x10] sm:$0xff] %v129_v30 }
  0xa6   :  { %v125_v31 = vpop.f32.mrf.mxu0  ;;  %v130_v32 = vpop.f32.mrf.mxu1 }
  0xa7   :  { %v126_v33 = vadd.f32 %v200_v26, %v125_v31  ;;  %v131_v34 = vadd.f32 %v200_v26, %v130_v32 }
  0xa9   :  { %134 = vst [vmem:[%s287_s5 + $0x8] sm:$0xff] %v126_v33 }
  0xaa   :  { %136 = vst [vmem:[%s287_s5 + $0x18] sm:$0xff] %v131_v34 }

// kernel: trans_encoder_forward.5
= control target key start
LH: loop header
LB: loop body
LE: loop exit
PB: predicated region body
PF: predicated region fallthrough
CT: control target
= control target key end

     0   :  { %vm346_vm0 = vcmask 64512   ;;  %s1372_s28 = smov 112   ;;  %s1373_s29 = smov 120   ;;  %vm397_vm1 = vcmask 130048   ;;  %vm664_vm2 = vcmask 1043456   ;;  %vm1124_vm3 = vcmask 1040384   ;;  %s1753_s5 = inlined_call_operand.vmem [shape: bf16[128,32], index: 5, kind: input, shape index: {}]   ;;  %s1754_s3 = inlined_call_operand.vmem [shape: bf16[128,32], index: 3, kind: input, shape index: {}]   ;;  %s1755_s1 = inlined_call_operand.vmem [shape: f32[1,128], index: 1, kind: input, shape index: {}]   ;;  %s1756_s2 = inlined_call_operand.vmem [shape: f32[1,128], index: 2, kind: input, shape index: {}]   ;;  %s1757_s6 = inlined_call_operand.vmem [shape: f32[1,32], index: 6, kind: input, shape index: {}]   ;;  %s1758_s0 = inlined_call_operand.vmem [shape: bf16[2,16,128], index: 0, kind: input, shape index: {}, may-alias: {0,11}]   ;;  %s1759_s4 = inlined_call_operand.vmem [shape: f32[1,32], index: 4, kind: input, shape index: {}]   ;;  %s1760_s7 = inlined_call_operand.vmem [shape: bf16[128,32], index: 7, kind: input, shape index: {}]   ;;  %s1761_s8 = inlined_call_operand.vmem [shape: f32[1,32], index: 8, kind: input, shape index: {}]   ;;  %s1762_s9 = inlined_call_operand.vmem [shape: bf16[32,128], index: 9, kind: input, shape index: {}]   ;;  %s1763_s10 = inlined_call_operand.vmem [shape: f32[1,128], index: 10, kind: input, shape index: {}]   ;;  %s1764_s11 = inlined_call_operand.vmem [shape: bf16[2,16,128], index: 11, kind: output, shape index: {0}, may-alias: {0,11}]   ;;  %s1765_s12 = inlined_call_operand.vmem [shape: f32[1,2,128], index: 12, kind: output, shape index: {1}]  }
   0x1   :  { %v1270_v0 = vld [vmem:[%s1753_s5 + $0x38] sm:$0xff]  ;;  %v1269_v2 = vld [vmem:[%s1753_s5 + $0x30] sm:$0xff]  ;;  %v1268_v4 = vld [vmem:[%s1753_s5 + $0x28] sm:$0xff] }
   0x2   :  { %v1262_v1 = vld [vmem:[%s1754_s3 + $0x38] sm:$0xff]  ;;  %222 = vmatpush.bf16.msra.mxu1 %v1270_v0  ;;  %v1261_v3 = vld [vmem:[%s1754_s3 + $0x30] sm:$0xff]  ;;  %v1260_v5 = vld [vmem:[%s1754_s3 + $0x28] sm:$0xff] }
   0x3   :  { %135 = vmatpush.bf16.msra.mxu0 %v1262_v1  ;;  %v1267_v6 = vld [vmem:[%s1753_s5 + $0x20] sm:$0xff]  ;;  %v1266_v8 = vld [vmem:[%s1753_s5 + $0x18] sm:$0xff]  ;;  %v1265_v14 = vld [vmem:[%s1753_s5 + $0x10] sm:$0xff] }
   0x4   :  { %v1259_v7 = vld [vmem:[%s1754_s3 + $0x20] sm:$0xff]  ;;  %v1258_v9 = vld [vmem:[%s1754_s3 + $0x18] sm:$0xff]  ;;  %v1257_v15 = vld [vmem:[%s1754_s3 + $0x10] sm:$0xff] }
   0x5   :  { %v1280_v10 = vld [vmem:[%s1758_s0] sm:$0xff]   ;;  %v1264_v19 = vld [vmem:[%s1753_s5 + $0x8] sm:$0xff]  ;;  %v1278_v43 = vld [vmem:[%s1760_s7 + $0x38] sm:$0xff] }
   0x6   :  { %223 = vmatpush.bf16.msra.mxu1 %v1269_v2  ;;  %v1281_v11 = vunpack.c.l.bf16 %v1280_v10  ;;  %v1282_v12 = vunpack.c.h.bf16 %v1280_v10  ;;  %v1302_v13 = vld [vmem:[%s1755_s1] ss:$0 sm:$0xff]  ;;  %v1256_v20 = vld [vmem:[%s1754_s3 + $0x8] sm:$0xff]  ;;  %309 = vmatpush.bf16.msra.mxu2 %v1278_v43  ;;  %v1277_v47 = vld [vmem:[%s1760_s7 + $0x30] sm:$0xff] }
   0x7   :  { %136 = vmatpush.bf16.msra.mxu0 %v1261_v3  ;;  %v1303_v18 = vld [vmem:[%s1756_s2] ss:$0 sm:$0xff]  ;;  %v1297_v26 = vld [vmem:[%s1758_s0 + $0x8] sm:$0xff]   ;;  %v1274_v0 = vld [vmem:[%s1760_s7 + $0x18] sm:$0xff] }
   0x8   :  { %v53_v16 = vmul.f32 %v1302_v13, %v1281_v11  ;;  %v54_v17 = vmul.f32 %v1302_v13, %v1282_v12  ;;  %v1263_v23 = vld [vmem:[%s1753_s5] sm:$0xff]  ;;  %v1285_v27 = vunpack.c.l.bf16 %v1297_v26  ;;  %v1286_v28 = vunpack.c.h.bf16 %v1297_v26  ;;  %v1276_v55 = vld [vmem:[%s1760_s7 + $0x28] sm:$0xff] }
   0x9   :  { %v1255_v24 = vld [vmem:[%s1754_s3] sm:$0xff]  ;;  %v1272_v12 = vld [vmem:[%s1760_s7 + $0x8] sm:$0xff] }
   0xa   :  { %224 = vmatpush.bf16.msra.mxu1 %v1268_v4  ;;  %v1491_v21 = vadd.f32 %v1303_v18, %v53_v16  ;;  %v1493_v22 = vadd.f32 %v1303_v18, %v54_v17  ;;  %v55_v29 = vmul.f32 %v1302_v13, %v1285_v27  ;;  %v56_v30 = vmul.f32 %v1302_v13, %v1286_v28  ;;  %v1304_v36 = vld [vmem:[%s1757_s6] ss:$0 sm:$0xff] }
   0xb   :  { %137 = vmatpush.bf16.msra.mxu0 %v1260_v5  ;;  %v1305_v38 = vld [vmem:[%s1759_s4] ss:$0 sm:$0xff]  ;;  %310 = vmatpush.bf16.msra.mxu2 %v1277_v47 }
   0xc   :  { %v1503_v25 = vpack.c.bf16 %v1493_v22, %v1491_v21  ;;  %v1510_v31 = vadd.f32 %v1303_v18, %v55_v29  ;;  %v1512_v32 = vadd.f32 %v1303_v18, %v56_v30  ;;  %v1275_v59 = vld [vmem:[%s1760_s7 + $0x20] sm:$0xff] }
   0xd   :  { %v1271_v16 = vld [vmem:[%s1760_s7] sm:$0xff] }
   0xe   :  { %225 = vmatpush.bf16.msra.mxu1 %v1267_v6  ;;  %v1516_v33 = vpack.c.bf16 %v1512_v32, %v1510_v31  ;;  %v1273_v6 = vld [vmem:[%s1760_s7 + $0x10] sm:$0xff] }
   0xf   :  { %138 = vmatpush.bf16.msra.mxu0 %v1259_v7  ;;  %311 = vmatpush.bf16.msra.mxu2 %v1276_v55 }
  0x12   :  { %226 = vmatpush.bf16.msra.mxu1 %v1266_v8 }
  0x13   :  { %139 = vmatpush.bf16.msra.mxu0 %v1258_v9  ;;  %312 = vmatpush.bf16.msra.mxu2 %v1275_v59 }
  0x16   :  { %227 = vmatpush.bf16.msra.mxu1 %v1265_v14 }
  0x17   :  { %140 = vmatpush.bf16.msra.mxu0 %v1257_v15  ;;  %313 = vmatpush.bf16.msra.mxu2 %v1274_v0 }
  0x1a   :  { %228 = vmatpush.bf16.msra.mxu1 %v1264_v19 }
  0x1b   :  { %141 = vmatpush.bf16.msra.mxu0 %v1256_v20  ;;  %314 = vmatpush.bf16.msra.mxu2 %v1273_v6 }
  0x1e   :  { %229 = vmatpush.bf16.msra.mxu1 %v1263_v23 }
  0x1f   :  { %142 = vmatpush.bf16.msra.mxu0 %v1255_v24  ;;  %315 = vmatpush.bf16.msra.mxu2 %v1272_v12 }
  0x21   :  { %230 = vmatmul.bf16.vlgmr.msra.gmra.mxu1 %v1503_v25 }
  0x22   :  { %143 = vmatmul.bf16.vlgmr.msra.gmra.mxu0 %v1503_v25 }
  0x23   :  { %316 = vmatpush.bf16.msra.mxu2 %v1271_v16 }
  0x26   :  { %317 = vmatmul.bf16.vlgmr.msra.gmra.mxu2 %v1503_v25 }
  0x31   :  { %235 = vmatmul.bf16.gmra.mxu1 %v1516_v33 }
  0x32   :  { %148 = vmatmul.bf16.gmra.mxu0 %v1516_v33 }
  0x36   :  { %322 = vmatmul.bf16.gmra.mxu2 %v1516_v33 }
  0x9e   :  { %v231_v34 = vpop.f32.mrf.mxu1 }
  0x9f   :  { %v144_v35 = vpop.f32.mrf.mxu0  ;;  %v232_v37 = vadd.f32 %v1304_v36, %v231_v34 }
  0xa0   :  { %v145_v44 = vadd.f32 %v1305_v38, %v144_v35 }
  0xa1   :  { %v332_v41 = vpack.c.bf16 %v232_v37, %v232_v37 }
  0xa2   :  { %v328_v50 = vpack.c.bf16 %v145_v44, %v145_v44 }
  0xa3   :  { %v343_v48 = vunpack.c.l.b16 %v332_v41 }
  0xa4   :  { %v338_v57 = vunpack.c.l.b16 %v328_v50 }
  0xa6   :  { %v233_v39 = vpop.f32.mrf.mxu1 }
  0xa7   :  { %v146_v40 = vpop.f32.mrf.mxu0  ;;  %v234_v42 = vadd.f32 %v1304_v36, %v233_v39 }
  0xa8   :  { %v147_v46 = vadd.f32 %v1305_v38, %v146_v40 }
  0xa9   :  { %v333_v45 = vpack.c.bf16 %v234_v42, %v234_v42 }
  0xaa   :  { %v329_v52 = vpack.c.bf16 %v147_v46, %v147_v46 }
  0xab   :  { %v344_v49 = vunpack.c.l.b16 %v333_v45 }
  0xac   :  { %v339_v58 = vunpack.c.l.b16 %v329_v52 }
  0xad   :  { %v1532_v51 = vpack.c.b16 %v344_v49, %v343_v48 }
  0xae   :  { %v236_v53 = vpop.f32.mrf.mxu1  ;;  %v1546_v61 = vpack.c.b16 %v339_v58, %v338_v57 }
  0xaf   :  { %v149_v54 = vpop.f32.mrf.mxu0  ;;  %717 = vrot.lane.b32.xlu2 %v1532_v51, %s1372_s28  ;;  %511 = vrot.lane.b32.xlu0 %v1532_v51, %s1373_s29  ;;  %v351_v56 = vsel %vm346_vm0, %v1532_v51, 0  ;;  %v237_v60 = vadd.f32 %v1304_v36, %v236_v53 }
  0xb0   :  { %360 = vmatpush.bf16.xpose.msra.mxu3 %v351_v56  ;;  %v150_v3 = vadd.f32 %v1305_v38, %v149_v54 }
  0xb1   :  { %v334_v1 = vpack.c.bf16 %v237_v60, %v237_v60 }
  0xb2   :  { %v330_v9 = vpack.c.bf16 %v150_v3, %v150_v3 }
  0xb3   :  { %v374_v7 = vunpack.c.l.b16 %v334_v1 }
  0xb4   :  { %v369_v14 = vunpack.c.l.b16 %v330_v9 }
  0xb6   :  { %v238_v62 = vpop.f32.mrf.mxu1 }
  0xb7   :  { %v151_v63 = vpop.f32.mrf.mxu0  ;;  %v239_v2 = vadd.f32 %v1304_v36, %v238_v62  ;;  %715 = vrot.lane.b32.xlu2 %v1546_v61, %s1372_s28  ;;  %509 = vrot.lane.b32.xlu0 %v1546_v61, %s1373_s29  ;;  %v1306_v36 = vld [vmem:[%s1761_s8] ss:$0 sm:$0xff]  ;;  %s1374_s8 = smov 104  }
  0xb8   :  { %1231 = vmatmul.msk.bf16.vlgmr.msra.gmra.mxu3 %vm346_vm0, %v1546_v61  ;;  %v152_v5 = vadd.f32 %v1305_v38, %v151_v63  ;;  %v318_v38 = vpop.f32.mrf.mxu2 }
  0xb9   :  { %v335_v4 = vpack.c.bf16 %v239_v2, %v239_v2  ;;  %v319_v39 = vadd.f32 %v1306_v36, %v318_v38 }
  0xba   :  { %v331_v11 = vpack.c.bf16 %v152_v5, %v152_v5 }
  0xbb   :  { %v375_v8 = vunpack.c.l.b16 %v335_v4  ;;  %v446_v41 = vpack.c.bf16 %v319_v39, %v319_v39 }
  0xbc   :  { %v370_v15 = vunpack.c.l.b16 %v331_v11 }
  0xbd   :  { %v1560_v10 = vpack.c.b16 %v375_v8, %v374_v7  ;;  %v457_v45 = vunpack.c.l.b16 %v446_v41 }
  0xbe   :  { %v1572_v17 = vpack.c.b16 %v370_v15, %v369_v14 }
  0xbf   :  { %535 = vrot.lane.b32.xlu1 %v1560_v10, %s1373_s29  ;;  %v381_v13 = vsel %vm346_vm0, %v1560_v10, 0 }
  0xc0   :  { %390 = vmatpush.bf16.xpose.msrb.mxu3 %v381_v13  ;;  %v320_v43 = vpop.f32.mrf.mxu2 }
  0xc1   :  { %v321_v44 = vadd.f32 %v1306_v36, %v320_v43 }
  0xc3   :  { %v447_v46 = vpack.c.bf16 %v321_v44, %v321_v44 }
  0xc5   :  { %v458_v47 = vunpack.c.l.b16 %v447_v46 }
  0xc7   :  { %533 = vrot.lane.b32.xlu1 %v1572_v17, %s1373_s29  ;;  %v1593_v48 = vpack.c.b16 %v458_v47, %v457_v45 }
  0xc8   :  { %1232 = vmatmul.msk.bf16.vlgmr.msrb.gmra.mxu3 %vm346_vm0, %v1572_v17  ;;  %v323_v49 = vpop.f32.mrf.mxu2 }
  0xc9   :  { %471 = vmatpush.bf16.msra.mxu3 %v1593_v48  ;;  %v324_v50 = vadd.f32 %v1306_v36, %v323_v49 }
  0xcb   :  { %v448_v52 = vpack.c.bf16 %v324_v50, %v324_v50 }
  0xcd   :  { %v485_v55 = vunpack.c.l.b16 %v448_v52 }
  0xd0   :  { %v325_v53 = vpop.f32.mrf.mxu2 }
  0xd1   :  { %v326_v54 = vadd.f32 %v1306_v36, %v325_v53 }
  0xd3   :  { %v449_v56 = vpack.c.bf16 %v326_v54, %v326_v54 }
  0xd5   :  { %v486_v57 = vunpack.c.l.b16 %v449_v56 }
  0xd7   :  { %v1596_v58 = vpack.c.b16 %v486_v57, %v485_v55 }
  0xd9   :  { %499 = vmatpush.bf16.msrb.mxu3 %v1596_v58 }
 0x109   :  { %v718_v18 = vpop.permute.xlu2 %717 }
 0x10a   :  { %v723_v19 = vsel %vm346_vm0, %v718_v18, 0 }
 0x10b   :  { %732 = vmatpush.bf16.xpose.msrb.mxu2 %v723_v19 }
 0x111   :  { %v716_v20 = vpop.permute.xlu2 %715 }
 0x112   :  { %1243 = vmatmul.msk.bf16.vlgmr.msrb.gmra.mxu2 %vm346_vm0, %v716_v20 }
 0x121   :  { %v512_v23 = vpop.permute.xlu0 %511 }
 0x122   :  { %v517_v24 = vsel %vm346_vm0, %v512_v23, 0 }
 0x123   :  { %526 = vmatpush.bf16.xpose.msrb.mxu0 %v517_v24 }
 0x129   :  { %v510_v26 = vpop.permute.xlu0 %509 }
 0x12a   :  { %1235 = vmatmul.msk.bf16.vlgmr.msrb.gmra.mxu0 %vm346_vm0, %v510_v26 }
 0x131   :  { %v536_v27 = vpop.permute.xlu1 %535 }
 0x132   :  { %v541_v28 = vsel %vm346_vm0, %v536_v27, 0 }
 0x133   :  { %550 = vmatpush.bf16.xpose.msrb.mxu1 %v541_v28 }
 0x139   :  { %v534_v25 = vpop.permute.xlu1 %533 }
 0x13a   :  { %1236 = vmatmul.msk.bf16.vlgmr.msrb.gmra.mxu1 %vm346_vm0, %v534_v25 }
 0x13b   :  { %v362_v29 = vpop.f32.mrf.mxu3 }
 0x13c   :  { %v398_v30 = vsel %vm397_vm1, %v362_v29, -inf }
 0x13d   :  { %399 = vmax.xlane.f32.xlu0 %v398_v30 }
 0x143   :  { %v364_v33 = vpop.f32.mrf.mxu3 }
 0x144   :  { %v401_v34 = vsel %vm397_vm1, %v364_v33, -inf }
 0x145   :  { %402 = vmax.xlane.f32.xlu1 %v401_v34 }
 0x14b   :  { %v392_v35 = vpop.f32.mrf.mxu3 }
 0x14c   :  { %v404_v37 = vsel %vm397_vm1, %v392_v35, -inf }
 0x14d   :  { %405 = vmax.xlane.f32.xlu2 %v404_v37 }
 0x153   :  { %v394_v40 = vpop.f32.mrf.mxu3 }
 0x154   :  { %v407_v42 = vsel %vm397_vm1, %v394_v40, -inf }
 0x155   :  { %408 = vmax.xlane.f32.xlu2 %v407_v42 }
 0x195   :  { %v1605_v19 = vpop.f32.mrf.mxu2 }
 0x19d   :  { %v1613_v25 = vpop.f32.mrf.mxu2 }
 0x19e   :  { %v766_v30 = vsel %vm397_vm1, %v1613_v25, -inf }
 0x1a7   :  { %v528_v9 = vpop.f32.mrf.mxu0 }
 0x1a8   :  { %v557_v16 = vsel %vm397_vm1, %v528_v9, -inf }
 0x1af   :  { %v530_v20 = vpop.f32.mrf.mxu0 }
 0x1b0   :  { %v400_v59 = vpop.xlane.xlu0 %399  ;;  %v560_v27 = vsel %vm397_vm1, %v530_v20, -inf }
 0x1b1   :  { %v410_v60 = vsub.f32 %v362_v29, %v400_v59  ;;  %v763_v29 = vsel %vm397_vm1, %v1605_v19, -inf }
 0x1b3   :  { %v414_v62 = vmul.f32 1.442695, %v410_v60 }
 0x1b5   :  { %1308 = vpow2.f32 %v414_v62 }
 0x1b7   :  { %v1601_v11 = vpop.f32.mrf.mxu1 }
 0x1b8   :  { %v403_v63 = vpop.xlane.xlu1 %402 }
 0x1b9   :  { %v411_v0 = vsub.f32 %v364_v33, %v403_v63  ;;  %v563_v33 = vsel %vm397_vm1, %v1601_v11, -inf }
 0x1bb   :  { %v1309_v1 = vpop.eup %1308  ;;  %v416_v2 = vmul.f32 1.442695, %v411_v0 }
 0x1bc   :  { %v422_v3 = vsel %vm397_vm1, %v1309_v1, 0.0 }
 0x1bd   :  { %1310 = vpow2.f32 %v416_v2  ;;  %423 = vadd.xlane.f32.xlu0 %v422_v3 }
 0x1bf   :  { %v1607_v23 = vpop.f32.mrf.mxu1 }
 0x1c0   :  { %v406_v4 = vpop.xlane.xlu2 %405  ;;  %v566_v26 = vsel %vm397_vm1, %v1607_v23, -inf }
 0x1c1   :  { %v412_v5 = vsub.f32 %v392_v35, %v406_v4 }
 0x1c3   :  { %v1311_v6 = vpop.eup %1310  ;;  %v418_v7 = vmul.f32 1.442695, %v412_v5 }
 0x1c4   :  { %v425_v8 = vsel %vm397_vm1, %v1311_v6, 0.0 }
 0x1c5   :  { %1312 = vpow2.f32 %v418_v7  ;;  %426 = vadd.xlane.f32.xlu1 %v425_v8 }
 0x1c8   :  { %v409_v12 = vpop.xlane.xlu2 %408 }
 0x1c9   :  { %v413_v13 = vsub.f32 %v394_v40, %v409_v12 }
 0x1cb   :  { %v1313_v14 = vpop.eup %1312  ;;  %v420_v15 = vmul.f32 1.442695, %v413_v13 }
 0x1cc   :  { %v428_v18 = vsel %vm397_vm1, %v1313_v14, 0.0 }
 0x1cd   :  { %1314 = vpow2.f32 %v420_v15  ;;  %558 = vmax.xlane.f32.xlu1 %v557_v16  ;;  %429 = vadd.xlane.f32.xlu2 %v428_v18 }
 0x1d3   :  { %v1315_v24 = vpop.eup %1314 }
 0x1d4   :  { %v431_v28 = vsel %vm397_vm1, %v1315_v24, 0.0 }
 0x1d5   :  { %567 = vmax.xlane.f32.xlu1 %v566_v26  ;;  %561 = vmax.xlane.f32.xlu2 %v560_v27 }
 0x1d6   :  { %432 = vadd.xlane.f32.xlu0 %v431_v28 }
 0x1dd   :  { %764 = vmax.xlane.f32.xlu1 %v763_v29  ;;  %767 = vmax.xlane.f32.xlu2 %v766_v30 }
 0x1de   :  { %564 = vmax.xlane.f32.xlu0 %v563_v33 }
 0x1f2   :  { %610 = vrot.lane.b32.xlu0 %v1593_v48, %s1373_s29 }
 0x230   :  { %v424_v34 = vpop.xlane.xlu0 %423 }
 0x231   :  { %1316 = vrcp.f32 %v424_v34 }
 0x237   :  { %v1317_v36 = vpop.eup %1316 }
 0x238   :  { %v427_v35 = vpop.xlane.xlu1 %426  ;;  %v438_v37 = vmul.f32 %v1317_v36, %v1309_v1 }
 0x239   :  { %1318 = vrcp.f32 %v427_v35 }
 0x23a   :  { %v442_v39 = vpack.c.bf16 %v438_v37, %v438_v37 }
 0x23c   :  { %v452_v46 = vunpack.c.l.b16 %v442_v39 }
 0x23f   :  { %v1319_v38 = vpop.eup %1318 }
 0x240   :  { %v439_v40 = vmul.f32 %v1319_v38, %v1311_v6  ;;  %v559_v41 = vpop.xlane.xlu1 %558  ;;  %v430_v42 = vpop.xlane.xlu2 %429 }
 0x241   :  { %v569_v43 = vsub.f32 %v528_v9, %v559_v41  ;;  %1320 = vrcp.f32 %v430_v42 }
 0x242   :  { %v443_v44 = vpack.c.bf16 %v439_v40, %v439_v40 }
 0x243   :  { %v573_v45 = vmul.f32 1.442695, %v569_v43 }
 0x244   :  { %v453_v47 = vunpack.c.l.b16 %v443_v44 }
 0x245   :  { %1322 = vpow2.f32 %v573_v45 }
 0x246   :  { %v454_v49 = vpack.c.b16 %v453_v47, %v452_v46 }
 0x247   :  { %v1321_v54 = vpop.eup %1320 }
 0x248   :  { %1233 = vmatmul.msk.bf16.vlgmr.msra.gmra.mxu3 %vm397_vm1, %v454_v49  ;;  %v562_v50 = vpop.xlane.xlu2 %561  ;;  %v440_v59 = vmul.f32 %v1321_v54, %v1313_v14 }
 0x249   :  { %v433_v52 = vpop.xlane.xlu0 %432  ;;  %v570_v53 = vsub.f32 %v530_v20, %v562_v50 }
 0x24a   :  { %1324 = vrcp.f32 %v433_v52  ;;  %v444_v62 = vpack.c.bf16 %v440_v59, %v440_v59 }
 0x24b   :  { %v1624_v55 = vpop.eup %1322  ;;  %v575_v56 = vmul.f32 1.442695, %v570_v53 }
 0x24c   :  { %v581_v57 = vsel %vm397_vm1, %v1624_v55, 0.0  ;;  %v480_v5 = vunpack.c.l.b16 %v444_v62 }
 0x24d   :  { %582 = vadd.xlane.f32.xlu2 %v581_v57  ;;  %1326 = vpow2.f32 %v575_v56 }
 0x250   :  { %v1325_v60 = vpop.eup %1324  ;;  %v768_v26 = vpop.xlane.xlu2 %767 }
 0x251   :  { %v441_v63 = vmul.f32 %v1325_v60, %v1315_v24  ;;  %v565_v0 = vpop.xlane.xlu0 %564  ;;  %v776_v28 = vsub.f32 %v1613_v25, %v768_v26  ;;  %v508_v25 = vld [vmem:[%s1762_s9] sm:$0xf] }
 0x252   :  { %v571_v1 = vsub.f32 %v1601_v11, %v565_v0  ;;  %v568_v11 = vpop.xlane.xlu1 %567  ;;  %v694_v34 = vsel %vm664_vm2, %v508_v25, 0 }
 0x253   :  { %v445_v2 = vpack.c.bf16 %v441_v63, %v441_v63  ;;  %v1327_v3 = vpop.eup %1326  ;;  %v572_v14 = vsub.f32 %v1607_v23, %v568_v11  ;;  %v781_v30 = vmul.f32 1.442695, %v776_v28  ;;  %703 = vmatpush.bf16.msra.mxu1 %v694_v34  ;;  %v657_v28 = vld [vmem:[%s1762_s9 + $0x4] sm:$0xf] }
 0x254   :  { %v577_v4 = vmul.f32 1.442695, %v571_v1  ;;  %v584_v7 = vsel %vm397_vm1, %v1327_v3, 0.0 }
 0x255   :  { %v481_v6 = vunpack.c.l.b16 %v445_v2  ;;  %585 = vadd.xlane.f32.xlu0 %v584_v7  ;;  %v579_v16 = vmul.f32 1.442695, %v572_v14 }
 0x256   :  { %1328 = vpow2.f32 %v577_v4 }
 0x257   :  { %v482_v8 = vpack.c.b16 %v481_v6, %v480_v5  ;;  %1330 = vpow2.f32 %v579_v16 }
 0x259   :  { %1234 = vmatmul.msk.bf16.vlgmr.msrb.gmra.mxu3 %vm397_vm1, %v482_v8 }
 0x25a   :  { %v765_v15 = vpop.xlane.xlu1 %764 }
 0x25b   :  { %v775_v18 = vsub.f32 %v1605_v19, %v765_v15 }
 0x25c   :  { %v1631_v9 = vpop.eup %1328 }
 0x25d   :  { %v587_v12 = vsel %vm397_vm1, %v1631_v9, 0.0  ;;  %v779_v20 = vmul.f32 1.442695, %v775_v18  ;;  %v1331_v24 = vpop.eup %1330 }
 0x25e   :  { %588 = vadd.xlane.f32.xlu1 %v587_v12  ;;  %v590_v27 = vsel %vm397_vm1, %v1331_v24, 0.0 }
 0x25f   :  { %1332 = vpow2.f32 %v779_v20 }
 0x260   :  { %1334 = vpow2.f32 %v781_v30 }
 0x264   :  { %v611_v13 = vpop.permute.xlu0 %610 }
 0x265   :  { %741 = vrot.lane.b32.xlu2 %v1560_v10, %s1372_s28  ;;  %623 = vmatpush.bf16.msra.mxu3 %v611_v13  ;;  %v1645_v29 = vpop.eup %1332 }
 0x266   :  { %v787_v23 = vsel %vm397_vm1, %v1645_v29, 0.0  ;;  %v1649_v33 = vpop.eup %1334 }
 0x267   :  { %v790_v19 = vsel %vm397_vm1, %v1649_v33, 0.0 }
 0x269   :  { %739 = vrot.lane.b32.xlu0 %v1572_v17, %s1372_s28 }
 0x277   :  { %635 = vrot.lane.b32.xlu1 %v1596_v58, %s1373_s29 }
 0x28e   :  { %591 = vadd.xlane.f32.xlu2 %v590_v27 }
 0x293   :  { %788 = vadd.xlane.f32.xlu0 %v787_v23 }
 0x2a1   :  { %791 = vadd.xlane.f32.xlu1 %v790_v19 }
 0x2a6   :  { %898 = vrot.lane.b32.xlu2 %v1532_v51, %s1374_s8 }
 0x2a7   :  { %920 = vrot.lane.b32.xlu0 %v1572_v17, %s1374_s8 }
 0x2ae   :  { %816 = vrot.lane.b32.xlu2 %v1593_v48, %s1372_s28 }
 0x2b6   :  { %896 = vrot.lane.b32.xlu2 %v1546_v61, %s1374_s8 }
 0x2be   :  { %922 = vrot.lane.b32.xlu2 %v1560_v10, %s1374_s8 }
 0x2c0   :  { %v583_v51 = vpop.xlane.xlu2 %582 }
 0x2c1   :  { %1336 = vrcp.f32 %v583_v51  ;;  %v863_v51 = vld [vmem:[%s1762_s9 + $0x8] sm:$0xf] }
 0x2c7   :  { %v1337_v35 = vpop.eup %1336 }
 0x2c8   :  { %v586_v17 = vpop.xlane.xlu0 %585  ;;  %v597_v37 = vmul.f32 %v1337_v35, %v1624_v55  ;;  %v742_v50 = vpop.permute.xlu2 %741 }
 0x2c9   :  { %1338 = vrcp.f32 %v586_v17  ;;  %v747_v53 = vsel %vm346_vm0, %v742_v50, 0  ;;  %v871_v17 = vsel %vm664_vm2, %v863_v51, 0 }
 0x2ca   :  { %v601_v39 = vpack.c.bf16 %v597_v37, %v597_v37 }
 0x2cb   :  { %v473_v36 = vpop.f32.mrf.mxu3 }
 0x2cc   :  { %v607_v44 = vunpack.c.l.b16 %v601_v39 }
 0x2cf   :  { %v1339_v38 = vpop.eup %1338 }
 0x2d0   :  { %v598_v40 = vmul.f32 %v1339_v38, %v1327_v3 }
 0x2d1   :  { %v589_v46 = vpop.xlane.xlu1 %588 }
 0x2d2   :  { %v602_v41 = vpack.c.bf16 %v598_v40, %v598_v40  ;;  %1340 = vrcp.f32 %v589_v46 }
 0x2d3   :  { %v475_v42 = vpop.f32.mrf.mxu3 }
 0x2d4   :  { %v506_v43 = vpack.c.bf16 %v475_v42, %v473_v36  ;;  %v608_v45 = vunpack.c.l.b16 %v602_v41 }
 0x2d6   :  { %1241 = vmatmul.msk.bf16.vlgmr.msra.gmra.mxu1 %vm346_vm0, %v506_v43  ;;  %v609_v61 = vpack.c.b16 %v608_v45, %v607_v44 }
 0x2d8   :  { %1237 = vmatmul.msk.bf16.vlgmr.msra.gmra.mxu3 %vm397_vm1, %v609_v61  ;;  %v1341_v55 = vpop.eup %1340 }
 0x2d9   :  { %v599_v57 = vmul.f32 %v1341_v55, %v1631_v9 }
 0x2db   :  { %v740_v56 = vpop.permute.xlu0 %739  ;;  %v603_v60 = vpack.c.bf16 %v599_v57, %v599_v57 }
 0x2dc   :  { %v501_v10 = vpop.f32.mrf.mxu3 }
 0x2dd   :  { %v632_v3 = vunpack.c.l.b16 %v603_v60 }
 0x2e4   :  { %v503_v47 = vpop.f32.mrf.mxu3 }
 0x2e5   :  { %v507_v49 = vpack.c.bf16 %v503_v47, %v501_v10 }
 0x2e7   :  { %1242 = vmatmul.msk.bf16.gmra.mxu1 %vm346_vm0, %v507_v49 }
 0x2e9   :  { %v636_v52 = vpop.permute.xlu1 %635 }
 0x2ea   :  { %648 = vmatpush.bf16.msrb.mxu3 %v636_v52 }
 0x2ee   :  { %756 = vmatpush.bf16.xpose.msra.mxu3 %v747_v53 }
 0x301   :  { %v592_v54 = vpop.xlane.xlu2 %591 }
 0x302   :  { %1342 = vrcp.f32 %v592_v54 }
 0x306   :  { %v789_v2 = vpop.xlane.xlu0 %788 }
 0x307   :  { %1344 = vrcp.f32 %v789_v2 }
 0x308   :  { %v1343_v59 = vpop.eup %1342 }
 0x309   :  { %v600_v62 = vmul.f32 %v1343_v59, %v1331_v24  ;;  %v899_v63 = vpop.permute.xlu2 %898 }
 0x30a   :  { %v904_v0 = vsel %vm346_vm0, %v899_v63, 0 }
 0x30b   :  { %v604_v1 = vpack.c.bf16 %v600_v62, %v600_v62  ;;  %913 = vmatpush.bf16.xpose.msrb.mxu1 %v904_v0 }
 0x30d   :  { %v633_v4 = vunpack.c.l.b16 %v604_v1  ;;  %v1345_v8 = vpop.eup %1344 }
 0x30e   :  { %v803_v9 = vmul.f32 %v1345_v8, %v1645_v29  ;;  %v666_v29 = vsel %vm664_vm2, %v657_v28, 0 }
 0x30f   :  { %v634_v5 = vpack.c.b16 %v633_v4, %v632_v3  ;;  %675 = vmatpush.bf16.msra.mxu0 %v666_v29 }
 0x310   :  { %v807_v11 = vpack.c.bf16 %v803_v9, %v803_v9 }
 0x311   :  { %1238 = vmatmul.msk.bf16.vlgmr.msrb.gmra.mxu3 %vm397_vm1, %v634_v5  ;;  %v817_v6 = vpop.permute.xlu2 %816 }
 0x312   :  { %829 = vmatpush.bf16.msra.mxu2 %v817_v6  ;;  %v813_v16 = vunpack.c.l.b16 %v807_v11 }
 0x313   :  { %880 = vmatpush.bf16.msrb.mxu0 %v871_v17 }
 0x314   :  { %v792_v7 = vpop.xlane.xlu1 %791 }
 0x315   :  { %1346 = vrcp.f32 %v792_v7 }
 0x319   :  { %v897_v12 = vpop.permute.xlu2 %896  ;;  %v921_v27 = vpop.permute.xlu0 %920 }
 0x31a   :  { %1249 = vmatmul.msk.bf16.vlgmr.msrb.gmra.mxu1 %vm346_vm0, %v897_v12 }
 0x31b   :  { %v1347_v13 = vpop.eup %1346 }
 0x31c   :  { %v804_v14 = vmul.f32 %v1347_v13, %v1649_v33 }
 0x31e   :  { %v808_v15 = vpack.c.bf16 %v804_v14, %v804_v14 }
 0x320   :  { %v814_v18 = vunpack.c.l.b16 %v808_v15 }
 0x321   :  { %1244 = vmatmul.msk.bf16.vlgmr.msra.gmra.mxu3 %vm346_vm0, %v740_v56  ;;  %v923_v20 = vpop.permute.xlu2 %922 }
 0x322   :  { %v815_v24 = vpack.c.b16 %v814_v18, %v813_v16  ;;  %v928_v26 = vsel %vm346_vm0, %v923_v20, 0 }
 0x323   :  { %937 = vmatpush.bf16.xpose.msrb.mxu2 %v928_v26 }
 0x324   :  { %1245 = vmatmul.msk.bf16.vlgmr.msra.gmra.mxu2 %vm397_vm1, %v815_v24 }
 0x334   :  { %1250 = vmatmul.msk.bf16.vlgmr.msrb.gmra.mxu2 %vm346_vm0, %v921_v27 }
 0x353   :  { %v1687_v19 = vpop.f32.mrf.mxu1 }
 0x35b   :  { %v625_v30 = vpop.f32.mrf.mxu3  ;;  %v1689_v25 = vpop.f32.mrf.mxu1 }
 0x363   :  { %v627_v23 = vpop.f32.mrf.mxu3 }
 0x364   :  { %v655_v33 = vpack.c.bf16 %v627_v23, %v625_v30  ;;  %v1691_v34 = vpop.f32.mrf.mxu1 }
 0x366   :  { %1239 = vmatmul.msk.bf16.vlgmr.msra.gmra.mxu0 %vm346_vm0, %v655_v33 }
 0x36c   :  { %v1697_v35 = vpop.f32.mrf.mxu1 }
 0x394   :  { %v650_v36 = vpop.f32.mrf.mxu3 }
 0x397   :  { %v915_v37 = vpop.f32.mrf.mxu1 }
 0x398   :  { %v944_v47 = vsel %vm397_vm1, %v915_v37, -inf }
 0x39c   :  { %v652_v38 = vpop.f32.mrf.mxu3 }
 0x39d   :  { %v656_v39 = vpack.c.bf16 %v652_v38, %v650_v36 }
 0x39f   :  { %1240 = vmatmul.msk.bf16.gmra.mxu0 %vm346_vm0, %v656_v39  ;;  %v917_v40 = vpop.f32.mrf.mxu1 }
 0x3a0   :  { %v947_v41 = vsel %vm397_vm1, %v917_v40, -inf }
 0x3a1   :  { %948 = vmax.xlane.f32.xlu0 %v947_v41 }
 0x3a4   :  { %v758_v42 = vpop.f32.mrf.mxu3 }
 0x3a5   :  { %v769_v43 = vsel %vm397_vm1, %v758_v42, -inf }
 0x3a6   :  { %770 = vmax.xlane.f32.xlu2 %v769_v43 }
 0x3a7   :  { %v831_v44 = vpop.f32.mrf.mxu2 }
 0x3ac   :  { %v760_v45 = vpop.f32.mrf.mxu3 }
 0x3ad   :  { %v772_v61 = vsel %vm397_vm1, %v760_v45, -inf }
 0x3ae   :  { %773 = vmax.xlane.f32.xlu1 %v772_v61 }
 0x3af   :  { %v833_v10 = vpop.f32.mrf.mxu2 }
 0x3b0   :  { %v861_v46 = vpack.c.bf16 %v833_v10, %v831_v44 }
 0x3b2   :  { %1247 = vmatmul.msk.bf16.vlgmr.msrb.gmra.mxu0 %vm346_vm0, %v861_v46 }
 0x3b5   :  { %997 = vrot.lane.b32.xlu0 %v1593_v48, %s1374_s8 }
 0x3b6   :  { %945 = vmax.xlane.f32.xlu1 %v944_v47 }
 0x3b7   :  { %v939_v49 = vpop.f32.mrf.mxu2 }
 0x3b8   :  { %v950_v50 = vsel %vm397_vm1, %v939_v49, -inf }
 0x3be   :  { %951 = vmax.xlane.f32.xlu1 %v950_v50 }
 0x3bf   :  { %v941_v52 = vpop.f32.mrf.mxu2 }
 0x3c0   :  { %v953_v53 = vsel %vm397_vm1, %v941_v52, -inf }
 0x3c6   :  { %954 = vmax.xlane.f32.xlu1 %v953_v53 }
 0x414   :  { %v949_v7 = vpop.xlane.xlu0 %948 }
 0x415   :  { %v957_v9 = vsub.f32 %v917_v40, %v949_v7 }
 0x417   :  { %v962_v13 = vmul.f32 1.442695, %v957_v9 }
 0x419   :  { %v771_v54 = vpop.xlane.xlu2 %770 }
 0x41a   :  { %v777_v55 = vsub.f32 %v758_v42, %v771_v54 }
 0x41c   :  { %v783_v56 = vmul.f32 1.442695, %v777_v55 }
 0x41e   :  { %1348 = vpow2.f32 %v783_v56 }
 0x421   :  { %v774_v57 = vpop.xlane.xlu1 %773 }
 0x422   :  { %v778_v0 = vsub.f32 %v760_v45, %v774_v57 }
 0x424   :  { %v1349_v59 = vpop.eup %1348  ;;  %v785_v2 = vmul.f32 1.442695, %v778_v0 }
 0x425   :  { %v793_v60 = vsel %vm397_vm1, %v1349_v59, 0.0 }
 0x426   :  { %794 = vadd.xlane.f32.xlu1 %v793_v60 }
 0x427   :  { %v998_v23 = vpop.permute.xlu0 %997 }
 0x429   :  { %v946_v48 = vpop.xlane.xlu1 %945 }
 0x42a   :  { %v956_v4 = vsub.f32 %v915_v37, %v946_v48 }
 0x42c   :  { %v960_v6 = vmul.f32 1.442695, %v956_v4 }
 0x431   :  { %v952_v62 = vpop.xlane.xlu1 %951 }
 0x432   :  { %v958_v63 = vsub.f32 %v939_v49, %v952_v62 }
 0x434   :  { %v964_v1 = vmul.f32 1.442695, %v958_v63 }
 0x436   :  { %1350 = vpow2.f32 %v964_v1  ;;  %v1044_v1 = vld [vmem:[%s1762_s9 + $0xc] sm:$0xf] }
 0x437   :  { %1352 = vpow2.f32 %v785_v2  ;;  %v1052_v2 = vsel %vm664_vm2, %v1044_v1, 0 }
 0x438   :  { %1354 = vpow2.f32 %v960_v6  ;;  %1061 = vmatpush.bf16.msra.mxu2 %v1052_v2 }
 0x439   :  { %1356 = vpow2.f32 %v962_v13  ;;  %v955_v16 = vpop.xlane.xlu1 %954 }
 0x43a   :  { %v959_v20 = vsub.f32 %v941_v52, %v955_v16 }
 0x43c   :  { %v1710_v3 = vpop.eup %1350  ;;  %v966_v24 = vmul.f32 1.442695, %v959_v20 }
 0x43d   :  { %v974_v5 = vsel %vm397_vm1, %v1710_v3, 0.0  ;;  %v1353_v8 = vpop.eup %1352 }
 0x43e   :  { %975 = vadd.xlane.f32.xlu2 %v974_v5  ;;  %v796_v12 = vsel %vm397_vm1, %v1353_v8, 0.0  ;;  %v1355_v11 = vpop.eup %1354  ;;  %1358 = vpow2.f32 %v966_v24 }
 0x43f   :  { %841 = vrot.lane.b32.xlu1 %v1596_v58, %s1372_s28  ;;  %v968_v14 = vsel %vm397_vm1, %v1355_v11, 0.0  ;;  %v1357_v15 = vpop.eup %1356 }
 0x440   :  { %v971_v18 = vsel %vm397_vm1, %v1357_v15, 0.0 }
 0x444   :  { %v1359_v26 = vpop.eup %1358 }
 0x445   :  { %v977_v27 = vsel %vm397_vm1, %v1359_v26, 0.0 }
 0x446   :  { %797 = vadd.xlane.f32.xlu2 %v796_v12 }
 0x44e   :  { %969 = vadd.xlane.f32.xlu2 %v968_v14 }
 0x456   :  { %972 = vadd.xlane.f32.xlu2 %v971_v18 }
 0x469   :  { %978 = vadd.xlane.f32.xlu1 %v977_v27 }
 0x46e   :  { %1022 = vrot.lane.b32.xlu2 %v1596_v58, %s1374_s8 }
 0x499   :  { %v795_v28 = vpop.xlane.xlu1 %794 }
 0x49a   :  { %1360 = vrcp.f32 %v795_v28 }
 0x4a0   :  { %v1361_v51 = vpop.eup %1360 }
 0x4a1   :  { %v805_v17 = vmul.f32 %v1361_v51, %v1349_v59  ;;  %v1307_v51 = vld [vmem:[%s1763_s10] ss:$0 sm:$0xff] }
 0x4a3   :  { %v809_v37 = vpack.c.bf16 %v805_v17, %v805_v17 }
 0x4a5   :  { %v838_v41 = vunpack.c.l.b16 %v809_v37 }
 0x4b1   :  { %v842_v29 = vpop.permute.xlu1 %841  ;;  %v976_v30 = vpop.xlane.xlu2 %975 }
 0x4b2   :  { %854 = vmatpush.bf16.msrb.mxu3 %v842_v29 }
 0x4b6   :  { %1010 = vmatpush.bf16.msra.mxu3 %v998_v23 }
 0x4b9   :  { %v798_v33 = vpop.xlane.xlu2 %797 }
 0x4ba   :  { %1362 = vrcp.f32 %v798_v33 }
 0x4c0   :  { %v1363_v36 = vpop.eup %1362 }
 0x4c1   :  { %v806_v38 = vmul.f32 %v1363_v36, %v1353_v8  ;;  %v970_v39 = vpop.xlane.xlu2 %969 }
 0x4c2   :  { %1364 = vrcp.f32 %v970_v39 }
 0x4c3   :  { %v810_v40 = vpack.c.bf16 %v806_v38, %v806_v38 }
 0x4c5   :  { %v839_v42 = vunpack.c.l.b16 %v810_v40 }
 0x4c7   :  { %v840_v58 = vpack.c.b16 %v839_v42, %v838_v41 }
 0x4c8   :  { %v1365_v44 = vpop.eup %1364 }
 0x4c9   :  { %1246 = vmatmul.msk.bf16.vlgmr.msrb.gmra.mxu3 %vm397_vm1, %v840_v58  ;;  %v973_v43 = vpop.xlane.xlu2 %972  ;;  %v984_v45 = vmul.f32 %v1365_v44, %v1355_v11  ;;  %v677_v11 = vpop.f32.mrf.mxu0 }
 0x4ca   :  { %1366 = vrcp.f32 %v973_v43  ;;  %v706_v24 = vadd.f32 %v1687_v19, %v677_v11 }
 0x4cb   :  { %v988_v10 = vpack.c.bf16 %v984_v45, %v984_v45  ;;  %1368 = vrcp.f32 %v976_v30 }
 0x4cd   :  { %v994_v50 = vunpack.c.l.b16 %v988_v10 }
 0x4d0   :  { %v1367_v61 = vpop.eup %1366 }
 0x4d1   :  { %v985_v46 = vmul.f32 %v1367_v61, %v1357_v15  ;;  %v1023_v47 = vpop.permute.xlu2 %1022  ;;  %v1369_v55 = vpop.eup %1368 }
 0x4d2   :  { %1035 = vmatpush.bf16.msra.mxu1 %v1023_v47  ;;  %v986_v56 = vmul.f32 %v1369_v55, %v1710_v3  ;;  %v679_v14 = vpop.f32.mrf.mxu0 }
 0x4d3   :  { %v989_v49 = vpack.c.bf16 %v985_v46, %v985_v46  ;;  %v708_v28 = vadd.f32 %v1689_v25, %v679_v14 }
 0x4d4   :  { %v990_v59 = vpack.c.bf16 %v986_v56, %v986_v56 }
 0x4d5   :  { %v995_v52 = vunpack.c.l.b16 %v989_v49 }
 0x4d6   :  { %v1019_v62 = vunpack.c.l.b16 %v990_v59 }
 0x4d7   :  { %v996_v53 = vpack.c.b16 %v995_v52, %v994_v50 }
 0x4d9   :  { %1251 = vmatmul.msk.bf16.vlgmr.msra.gmra.mxu3 %vm397_vm1, %v996_v53 }
 0x4da   :  { %v682_v15 = vpop.f32.mrf.mxu0 }
 0x4db   :  { %v711_v38 = vadd.f32 %v1691_v34, %v682_v15 }
 0x4dc   :  { %v979_v54 = vpop.xlane.xlu1 %978 }
 0x4dd   :  { %1370 = vrcp.f32 %v979_v54 }
 0x4e2   :  { %v684_v16 = vpop.f32.mrf.mxu0 }
 0x4e3   :  { %v1371_v57 = vpop.eup %1370  ;;  %v713_v58 = vadd.f32 %v1697_v35, %v684_v16 }
 0x4e4   :  { %v987_v60 = vmul.f32 %v1371_v57, %v1359_v26 }
 0x4e6   :  { %v991_v48 = vpack.c.bf16 %v987_v60, %v987_v60 }
 0x4e8   :  { %v1020_v63 = vunpack.c.l.b16 %v991_v48 }
 0x4ea   :  { %v1021_v0 = vpack.c.b16 %v1020_v63, %v1019_v62  ;;  %v882_v18 = vpop.f32.mrf.mxu0 }
 0x4eb   :  { %v892_v27 = vadd.f32 %v882_v18, %v706_v24 }
 0x4ec   :  { %1252 = vmatmul.msk.bf16.vlgmr.msra.gmra.mxu1 %vm397_vm1, %v1021_v0 }
 0x4f2   :  { %v884_v26 = vpop.f32.mrf.mxu0 }
 0x4f3   :  { %v893_v30 = vadd.f32 %v884_v26, %v708_v28 }
 0x54c   :  { %v856_v4 = vpop.f32.mrf.mxu3 }
 0x554   :  { %v858_v5 = vpop.f32.mrf.mxu3 }
 0x555   :  { %v862_v6 = vpack.c.bf16 %v858_v5, %v856_v4 }
 0x557   :  { %1248 = vmatmul.msk.bf16.gmra.mxu0 %vm346_vm0, %v862_v6 }
 0x55c   :  { %v1012_v3 = vpop.f32.mrf.mxu3 }
 0x564   :  { %v1014_v7 = vpop.f32.mrf.mxu3 }
 0x565   :  { %v1042_v8 = vpack.c.bf16 %v1014_v7, %v1012_v3 }
 0x567   :  { %1253 = vmatmul.msk.bf16.vlgmr.msra.gmra.mxu2 %vm346_vm0, %v1042_v8 }
 0x569   :  { %v1037_v9 = vpop.f32.mrf.mxu1 }
 0x571   :  { %v1039_v12 = vpop.f32.mrf.mxu1 }
 0x572   :  { %v1043_v13 = vpack.c.bf16 %v1039_v12, %v1037_v9 }
 0x577   :  { %1254 = vmatmul.msk.bf16.gmra.mxu2 %vm346_vm0, %v1043_v13 }
 0x5d4   :  { %v887_v36 = vpop.f32.mrf.mxu0 }
 0x5d5   :  { %v894_v40 = vadd.f32 %v887_v36, %v711_v38 }
 0x5dc   :  { %v889_v42 = vpop.f32.mrf.mxu0 }
 0x5dd   :  { %v895_v44 = vadd.f32 %v889_v42, %v713_v58 }
 0x5ea   :  { %v1063_v20 = vpop.f32.mrf.mxu2 }
 0x5eb   :  { %v1073_v29 = vadd.f32 %v1063_v20, %v892_v27 }
 0x5ed   :  { %v1077_v33 = vadd.f32 %v1073_v29, %v1491_v21 }
 0x5ef   :  { %v1085_v19 = vadd.f32 %v1307_v51, %v1077_v33 }
 0x5f2   :  { %v1065_v23 = vpop.f32.mrf.mxu2 }
 0x5f3   :  { %v1074_v17 = vadd.f32 %v1065_v23, %v893_v30 }
 0x5f5   :  { %v1078_v37 = vadd.f32 %v1074_v17, %v1493_v22 }
 0x5f7   :  { %v1086_v39 = vadd.f32 %v1307_v51, %v1078_v37 }
 0x5f9   :  { %v1290_v41 = vpack.c.bf16 %v1086_v39, %v1085_v19  ;;  %v1097_v34 = vadd.f32 %v1086_v39, %v1085_v19 }
 0x5fa   :  { %v1068_v25 = vpop.f32.mrf.mxu2 }
 0x5fb   :  { %1291 = vst [vmem:[%s1764_s11] sm:$0xff] %v1290_v41   ;;  %v1075_v21 = vadd.f32 %v1068_v25, %v894_v40 }
 0x5fd   :  { %v1079_v43 = vadd.f32 %v1075_v21, %v1510_v31 }
 0x5ff   :  { %v1087_v22 = vadd.f32 %v1307_v51, %v1079_v43 }
 0x601   :  { %v1098_v46 = vadd.f32 %v1097_v34, %v1087_v22 }
 0x602   :  { %v1070_v45 = vpop.f32.mrf.mxu2 }
 0x603   :  { %v1076_v61 = vadd.f32 %v1070_v45, %v895_v44 }
 0x605   :  { %v1080_v10 = vadd.f32 %v1076_v61, %v1512_v32 }
 0x607   :  { %v1088_v47 = vadd.f32 %v1307_v51, %v1080_v10 }
 0x609   :  { %v1295_v49 = vpack.c.bf16 %v1088_v47, %v1087_v22  ;;  %v1099_v50 = vadd.f32 %v1098_v46, %v1088_v47 }
 0x60b   :  { %1298 = vst [vmem:[%s1764_s11 + $0x8] sm:$0xff] %v1295_v49   ;;  %v1100_v52 = vrot.slane %v1099_v50, 4 }
 0x60d   :  { %v1101_v53 = vadd.f32 %v1100_v52, %v1099_v50 }
 0x60f   :  { %v1102_v35 = vrot.slane %v1101_v53, 2 }
 0x611   :  { %v1103_v54 = vadd.f32 %v1102_v35, %v1101_v53 }
 0x613   :  { %v1104_v31 = vrot.slane %v1103_v54, 1 }
 0x615   :  { %v1105_v55 = vadd.f32 %v1104_v31, %v1103_v54 }
 0x617   :  { %v1106_v56 = vmul.f32 0.03125, %v1105_v55 }
 0x619   :  { %v1107_v57 = vsub.f32 %v1085_v19, %v1106_v56  ;;  %v1108_v59 = vsub.f32 %v1086_v39, %v1106_v56  ;;  %v1109_v60 = vsub.f32 %v1087_v22, %v1106_v56  ;;  %v1110_v48 = vsub.f32 %v1088_v47, %v1106_v56 }
 0x61b   :  { %v1111_v32 = vmul.f32 %v1107_v57, %v1107_v57  ;;  %v1112_v62 = vmul.f32 %v1108_v59, %v1108_v59  ;;  %v1113_v63 = vmul.f32 %v1109_v60, %v1109_v60  ;;  %v1114_v1 = vmul.f32 %v1110_v48, %v1110_v48 }
 0x61d   :  { %v1115_v0 = vadd.f32 %v1112_v62, %v1111_v32 }
 0x61f   :  { %v1116_v2 = vadd.f32 %v1115_v0, %v1113_v63 }
 0x621   :  { %v1117_v4 = vadd.f32 %v1116_v2, %v1114_v1 }
 0x623   :  { %v1118_v5 = vrot.slane %v1117_v4, 4 }
 0x625   :  { %v1119_v6 = vadd.f32 %v1118_v5, %v1117_v4 }
 0x627   :  { %v1120_v3 = vrot.slane %v1119_v6, 2 }
 0x629   :  { %v1121_v7 = vadd.f32 %v1120_v3, %v1119_v6 }
 0x62b   :  { %v1122_v8 = vrot.slane %v1121_v7, 1 }
 0x62d   :  { %v1123_v9 = vadd.f32 %v1122_v8, %v1121_v7 }
 0x62f   :  { %v1125_v12 = vsel %vm1124_vm3, %v1105_v55, %v1123_v9 }
 0x630   :  { %1126 = vst [vmem:[%s1765_s12] sm:$0x3] %v1125_v12 }

</bundles_post_ra>
